<compile_context>
chip_gen: v5e
topology: v5e:2x2
jax: 0.10.0
libtpu: 0.0.40
codegen_flags: <defaults>
</compile_context>

<pallas_src>
import functools
import math

import jax
import jax.numpy as jnp
from jax.experimental import pallas as pl
from jax.experimental.pallas import tpu as pltpu


def _same_pad(k=1, dil=1):
    return math.ceil(dil * (k - 1))


def _pad_amounts(k, r):
    p = _same_pad(k, r)
    if p % 2 == 1:
        return p // 2 + 1, p // 2   # ConstantPad1d([p//2+1, p//2], 0.)
    return p // 2, p // 2


def _pick_batch_tile(B, C, L, step_budget_bytes=8 * 1024 * 1024):
    """Largest divisor of B whose double-buffered in+out blocks fit the per-step budget."""
    cap = max(1, step_budget_bytes // (16 * C * L))   # 2x in + 2x out, f32
    bt = min(B, cap)
    while B % bt != 0:
        bt -= 1
    return bt


# ---------------------------------------------------------------------------
# Fused kernel.  Grid = (phase, batch_tile); phase 0 = convs + stats, phase 1 = BN apply.
# y (= conv1 output, the residual) and h3 (= conv3 output) never leave VMEM.
# ---------------------------------------------------------------------------
def _bytenet_fused_kernel(x_ref, w1_ref, b1_ref, w2_ref, b2_ref, w3_ref, b3_ref,
                          gamma_ref, beta_ref,
                          o_ref,
                          xp_ref, y_ref, h3_ref, sum_ref, ssq_ref, scale_ref, shift_ref,
                          *, k, r, L, pad_l, pad_r, eps, n_total, mm_dtype):
    phase = pl.program_id(0)
    g = pl.program_id(1)
    bt, C, _ = x_ref.shape
    L_pad = L + pad_l + pad_r
    rows = bt * L

    # ------------------------------- phase 0 --------------------------------
    @pl.when(phase == 0)
    def _convs():
        # Halo rows of the padded scratch are zeroed once (they are never overwritten;
        # only the interior [pad_l, pad_l+L) is rewritten between convs).
        @pl.when(g == 0)
        def _():
            if pad_l:
                xp_ref[:, 0:pad_l, :] = jnp.zeros((bt, pad_l, C), mm_dtype)
            if pad_r:
                xp_ref[:, L_pad - pad_r:L_pad, :] = jnp.zeros((bt, pad_r, C), mm_dtype)
            sum_ref[...] = jnp.zeros_like(sum_ref)
            ssq_ref[...] = jnp.zeros_like(ssq_ref)

        def conv(w_ref, b_ref):
            # k-tap accumulation: k MXU matmuls (rows, C) @ (C, C) -> f32 accumulator.
            acc = jnp.zeros((rows, C), jnp.float32)
            for j in range(k):                              # static tap offsets
                tap = xp_ref[:, j * r:j * r + L, :].reshape(rows, C)
                acc = acc + jnp.dot(tap, w_ref[j], preferred_element_type=jnp.float32)
            return acc + b_ref[...]                         # (rows, C) f32

        # conv_1 (input block is NCL; transpose to channels-last on the XLU) ; residual y.
        x_blc = jnp.swapaxes(x_ref[...], 1, 2).astype(mm_dtype)   # (bt, L, C)
        xp_ref[:, pad_l:pad_l + L, :] = x_blc
        h1 = conv(w1_ref, b1_ref)
        y_ref[g] = h1.reshape(bt, L, C)                     # stays in VMEM

        # conv_2 + ReLU
        xp_ref[:, pad_l:pad_l + L, :] = h1.reshape(bt, L, C).astype(mm_dtype)
        h2 = jnp.maximum(conv(w2_ref, b2_ref), 0.0)

        # conv_3
        xp_ref[:, pad_l:pad_l + L, :] = h2.reshape(bt, L, C).astype(mm_dtype)
        h3 = conv(w3_ref, b3_ref)
        h3_ref[g] = h3.reshape(bt, L, C)                    # stays in VMEM

        # Per-channel BatchNorm partial statistics, accumulated across tiles.
        # NOTE: var = E[x^2] - E[x]^2 in f32; fine at these scales (see review note),
        # Chan-style centered partials would be needed for very large B*L.
        sum_ref[...] += jnp.sum(h3, axis=0, keepdims=True)          # (1, C)
        ssq_ref[...] += jnp.sum(h3 * h3, axis=0, keepdims=True)     # (1, C)

    # ------------------------------- phase 1 --------------------------------
    @pl.when(phase == 1)
    def _bn_residual_relu():
        @pl.when(g == 0)
        def _():
            n = jnp.float32(n_total)
            mean = sum_ref[...] / n
            var = jnp.maximum(ssq_ref[...] / n - mean * mean, 0.0)
            inv = jax.lax.rsqrt(var + jnp.float32(eps))
            sc = gamma_ref[...] * inv
            scale_ref[...] = sc
            shift_ref[...] = beta_ref[...] - mean * sc

        sc = scale_ref[...].reshape(1, 1, C)
        sh = shift_ref[...].reshape(1, 1, C)
        out_blc = jnp.maximum(h3_ref[g] * sc + sh + y_ref[g], 0.0)   # (bt, L, C) f32
        o_ref[...] = jnp.swapaxes(out_blc, 1, 2).astype(o_ref.dtype)  # back to NCL


def bytenet_block_pallas(x_ncl, params, *, k, r, eps, matmul_dtype=jnp.bfloat16):
    """x_ncl: (B, C, L) float32 (PyTorch NCL).  Conv weights as (k, C_in, C_out)."""
    w1, b1, w2, b2, w3, b3, gamma, beta = params
    x_ncl = x_ncl.astype(jnp.float32)
    B, C, L = x_ncl.shape
    pad_l, pad_r = _pad_amounts(k, r)
    L_pad = L + pad_l + pad_r

    if L % 8 != 0:
        # TODO(synk): support ragged L (pad the scratch interior to a sublane multiple and
        #             mask the BN statistics); not needed for the small demo shapes.
        raise NotImplementedError("bytenet_block_pallas requires L % 8 == 0")

    # Whole residual y and conv3 output h3 stay resident in VMEM across the phase axis.
    act_bytes = 2 * B * L * C * 4
    if act_bytes > 24 * 1024 * 1024:
        # TODO(synk): two-pass fallback (recompute y in pass 2) for activations too large
        #             to keep resident in VMEM.
        raise NotImplementedError("activations too large for the fully fused variant")

    bt = _pick_batch_tile(B, C, L)
    G = B // bt

    mmsize = jnp.dtype(matmul_dtype).itemsize
    est = (act_bytes
           + bt * L_pad * C * mmsize               # padded conv-input scratch
           + 4 * bt * C * L * 4                    # double-buffered x and out blocks
           + 3 * k * C * C * mmsize + 8 * C * 4)   # weights / biases / BN params / stats
    vmem_limit = int(min(max(2 * est, 32 * 1024 * 1024), 64 * 1024 * 1024))

    wt = lambda w: w.astype(matmul_dtype)
    row = lambda v: v.reshape(1, C).astype(jnp.float32)

    kernel = functools.partial(
        _bytenet_fused_kernel, k=k, r=r, L=L, pad_l=pad_l, pad_r=pad_r,
        eps=float(eps), n_total=B * L, mm_dtype=matmul_dtype)

    # Phase 0 reads x tile g; phase 1 reads nothing (y/h3 are in scratch) -> pin index to 0.
    spec_x = pl.BlockSpec((bt, C, L), lambda p, g: (g * (1 - p), 0, 0))
    spec_w = pl.BlockSpec((k, C, C), lambda p, g: (0, 0, 0))        # resident across grid
    spec_v = pl.BlockSpec((1, C), lambda p, g: (0, 0))
    # Output is only written in phase 1; in phase 0 the block index stays 0 so no
    # intermediate writebacks happen (block 0 is overwritten correctly at (1, 0)).
    spec_o = pl.BlockSpec((bt, C, L), lambda p, g: (g * p, 0, 0))

    return pl.pallas_call(
        kernel,
        out_shape=jax.ShapeDtypeStruct((B, C, L), jnp.float32),
        grid=(2, G),
        in_specs=[spec_x, spec_w, spec_v, spec_w, spec_v, spec_w, spec_v, spec_v, spec_v],
        out_specs=spec_o,
        scratch_shapes=[
            pltpu.VMEM((bt, L_pad, C), matmul_dtype),   # padded conv input (bf16 in perf mode)
            pltpu.VMEM((G, bt, L, C), jnp.float32),     # residual y = conv1(x), all tiles
            pltpu.VMEM((G, bt, L, C), jnp.float32),     # h3 = conv3(...), all tiles
            pltpu.VMEM((1, C), jnp.float32),            # running per-channel sum
            pltpu.VMEM((1, C), jnp.float32),            # running per-channel sum of squares
            pltpu.VMEM((1, C), jnp.float32),            # BN scale
            pltpu.VMEM((1, C), jnp.float32),            # BN shift
        ],
        compiler_params=pltpu.CompilerParams(
            dimension_semantics=("arbitrary", "arbitrary"),   # phase dependency -> sequential
            vmem_limit_bytes=vmem_limit),
    )(x_ncl, wt(w1), row(b1), wt(w2), row(b2), wt(w3), row(b3), row(gamma), row(beta))


def bytenet_block_reference(x_ncl, params, *, k, r, eps):
    """Pure-JAX f32 reference with identical semantics (for validation)."""
    w1, b1, w2, b2, w3, b3, gamma, beta = params
    pad_l, pad_r = _pad_amounts(k, r)
    x = jnp.transpose(x_ncl, (0, 2, 1))
    L = x.shape[1]

    def conv(h, w, b):
        hp = jnp.pad(h, ((0, 0), (pad_l, pad_r), (0, 0)))
        out = jnp.zeros_like(h)
        for j in range(k):
            out = out + jnp.einsum('blc,cd->bld', hp[:, j * r:j * r + L, :], w[j])
        return out + b.reshape(1, 1, -1)

    h1 = conv(x, w1, b1)
    h2 = jnp.maximum(conv(h1, w2, b2), 0.0)
    h3 = conv(h2, w3, b3)
    mean = h3.mean(axis=(0, 1), keepdims=True)
    var = ((h3 - mean) ** 2).mean(axis=(0, 1), keepdims=True)
    hn = (h3 - mean) / jnp.sqrt(var + eps) * gamma.reshape(1, 1, -1) + beta.reshape(1, 1, -1)
    out = jnp.maximum(hn + h1, 0.0)
    return jnp.transpose(out, (0, 2, 1))


if __name__ == "__main__":
    # Module config (types == 1 branch): hidden_size = 64, layer_norm_eps = 1e-12.
    B, C, L = 2, 64, 16
    k, r = 3, 2
    eps = 1e-12

    key = jax.random.PRNGKey(0)
    keys = jax.random.split(key, 8)
    w_scale = 1.0 / math.sqrt(C * k)   # deterministic synthetic init (Conv1d-like scale)

    def conv_params(kw, kb):
        w = jax.random.uniform(kw, (k, C, C), jnp.float32, -w_scale, w_scale)
        b = jax.random.uniform(kb, (1, C), jnp.float32, -w_scale, w_scale)
        return w, b

    w1, b1 = conv_params(keys[0], keys[1])
    w2, b2 = conv_params(keys[2], keys[3])
    w3, b3 = conv_params(keys[4], keys[5])
    gamma = jnp.ones((1, C), jnp.float32)    # BatchNorm affine init
    beta = jnp.zeros((1, C), jnp.float32)
    params = (w1, b1, w2, b2, w3, b3, gamma, beta)

    x = jax.random.normal(keys[6], (B, C, L), jnp.float32)

    ref = bytenet_block_reference(x, params, k=k, r=r, eps=eps)

    # f32 MXU operands.
    out_f32 = bytenet_block_pallas(x, params, k=k, r=r, eps=eps,
                                   matmul_dtype=jnp.float32)
    out_f32 = jax.block_until_ready(out_f32)
    assert out_f32.shape == (B, C, L)
    assert jnp.allclose(out_f32, ref, rtol=1e-2, atol=1e-2), \
        "Pallas (f32 matmul) output mismatch vs JAX reference"

    # Performance mode: bf16 MXU operands / bf16 padded scratch (f32 accumulation, BN,
    # residual), validated at a bf16-appropriate tolerance vs the f32 reference.
    out_bf16 = bytenet_block_pallas(x, params, k=k, r=r, eps=eps,
                                    matmul_dtype=jnp.bfloat16)
    out_bf16 = jax.block_until_ready(out_bf16)
    assert out_bf16.shape == (B, C, L)
    assert jnp.allclose(out_bf16, ref, rtol=1e-1, atol=1e-1), \
        "Pallas (bf16 matmul) output mismatch vs JAX reference"

    print("KERNEL_OK")
</pallas_src>

<mosaic_0001>
module attributes {stable_mosaic.version = 11 : i64} {
  func.func @_bytenet_fused_kernel(%arg0: i32, %arg1: i32, %arg2: memref<2x64x16xf32, #tpu.memory_space<vmem>>, %arg3: memref<3x64x64xf32, #tpu.memory_space<vmem>>, %arg4: memref<1x64xf32, #tpu.memory_space<vmem>>, %arg5: memref<3x64x64xf32, #tpu.memory_space<vmem>>, %arg6: memref<1x64xf32, #tpu.memory_space<vmem>>, %arg7: memref<3x64x64xf32, #tpu.memory_space<vmem>>, %arg8: memref<1x64xf32, #tpu.memory_space<vmem>>, %arg9: memref<1x64xf32, #tpu.memory_space<vmem>>, %arg10: memref<1x64xf32, #tpu.memory_space<vmem>>, %arg11: memref<2x64x16xf32, #tpu.memory_space<vmem>>, %arg12: memref<2x20x64xf32, #tpu.memory_space<vmem>>, %arg13: memref<1x2x16x64xf32, #tpu.memory_space<vmem>>, %arg14: memref<1x2x16x64xf32, #tpu.memory_space<vmem>>, %arg15: memref<1x64xf32, #tpu.memory_space<vmem>>, %arg16: memref<1x64xf32, #tpu.memory_space<vmem>>, %arg17: memref<1x64xf32, #tpu.memory_space<vmem>>, %arg18: memref<1x64xf32, #tpu.memory_space<vmem>>) attributes {dimension_semantics = [#tpu.dimension_semantics<arbitrary>, #tpu.dimension_semantics<arbitrary>], iteration_bounds = array<i64: 2, 1>, scalar_prefetch = 0 : i64, scratch_operands = 7 : i64, tpu.core_type = #tpu.core_type<tc>, window_params = [{transform_indices = @transform_0, window_bounds = array<i64: 2, 64, 16>}, {pipeline_mode = #tpu.pipeline_mode<synchronous>, transform_indices = @transform_1, window_bounds = array<i64: 3, 64, 64>}, {pipeline_mode = #tpu.pipeline_mode<synchronous>, transform_indices = @transform_2, window_bounds = array<i64: 1, 64>}, {pipeline_mode = #tpu.pipeline_mode<synchronous>, transform_indices = @transform_3, window_bounds = array<i64: 3, 64, 64>}, {pipeline_mode = #tpu.pipeline_mode<synchronous>, transform_indices = @transform_4, window_bounds = array<i64: 1, 64>}, {pipeline_mode = #tpu.pipeline_mode<synchronous>, transform_indices = @transform_5, window_bounds = array<i64: 3, 64, 64>}, {pipeline_mode = #tpu.pipeline_mode<synchronous>, transform_indices = @transform_6, window_bounds = array<i64: 1, 64>}, {pipeline_mode = #tpu.pipeline_mode<synchronous>, transform_indices = @transform_7, window_bounds = array<i64: 1, 64>}, {pipeline_mode = #tpu.pipeline_mode<synchronous>, transform_indices = @transform_8, window_bounds = array<i64: 1, 64>}, {transform_indices = @transform_9, window_bounds = array<i64: 2, 64, 16>}]} {
    %c0_i32 = arith.constant 0 : i32
    %0 = arith.cmpi eq, %arg0, %c0_i32 : i32
    %1 = arith.extui %0 : i1 to i32
    %c0_i32_0 = arith.constant 0 : i32
    %2 = arith.cmpi ne, %1, %c0_i32_0 : i32
    scf.if %2 {
      %c0_i32_2 = arith.constant 0 : i32
      %6 = arith.cmpi eq, %arg1, %c0_i32_2 : i32
      %7 = arith.extui %6 : i1 to i32
      %c0_i32_3 = arith.constant 0 : i32
      %8 = arith.cmpi ne, %7, %c0_i32_3 : i32
      scf.if %8 {
        %cst_100 = arith.constant 0.000000e+00 : f32
        %105 = vector.broadcast %cst_100 : f32 to vector<2x2x64xf32>
        %c0_101 = arith.constant 0 : index
        %c0_102 = arith.constant 0 : index
        %c0_103 = arith.constant 0 : index
        %106 = vector.load %arg12[%c0_101, %c0_102, %c0_103] : memref<2x20x64xf32, #tpu.memory_space<vmem>>, vector<2x2x64xf32>
        tpu.vector_store %arg12[%c0_101, %c0_102, %c0_103], %105 {strides = array<i32>} : memref<2x20x64xf32, #tpu.memory_space<vmem>>, vector<2x2x64xf32>,
        %cst_104 = arith.constant 0.000000e+00 : f32
        %107 = vector.broadcast %cst_104 : f32 to vector<2x2x64xf32>
        %c0_105 = arith.constant 0 : index
        %c18 = arith.constant 18 : index
        %c0_106 = arith.constant 0 : index
        %108 = vector.load %arg12[%c0_105, %c18, %c0_106] : memref<2x20x64xf32, #tpu.memory_space<vmem>>, vector<2x2x64xf32>
        tpu.vector_store %arg12[%c0_105, %c18, %c0_106], %107 {strides = array<i32>} : memref<2x20x64xf32, #tpu.memory_space<vmem>>, vector<2x2x64xf32>,
        %cst_107 = arith.constant 0.000000e+00 : f32
        %109 = vector.broadcast %cst_107 : f32 to vector<1x64xf32>
        %c0_108 = arith.constant 0 : index
        %c0_109 = arith.constant 0 : index
        %110 = vector.load %arg15[%c0_108, %c0_109] : memref<1x64xf32, #tpu.memory_space<vmem>>, vector<1x64xf32>
        tpu.vector_store %arg15[%c0_108, %c0_109], %109 {strides = array<i32>} : memref<1x64xf32, #tpu.memory_space<vmem>>, vector<1x64xf32>,
        %cst_110 = arith.constant 0.000000e+00 : f32
        %111 = vector.broadcast %cst_110 : f32 to vector<1x64xf32>
        %c0_111 = arith.constant 0 : index
        %c0_112 = arith.constant 0 : index
        %112 = vector.load %arg16[%c0_111, %c0_112] : memref<1x64xf32, #tpu.memory_space<vmem>>, vector<1x64xf32>
        tpu.vector_store %arg16[%c0_111, %c0_112], %111 {strides = array<i32>} : memref<1x64xf32, #tpu.memory_space<vmem>>, vector<1x64xf32>,
      } else {
      }
      %c0 = arith.constant 0 : index
      %c0_4 = arith.constant 0 : index
      %c0_5 = arith.constant 0 : index
      %9 = vector.load %arg2[%c0, %c0_4, %c0_5] : memref<2x64x16xf32, #tpu.memory_space<vmem>>, vector<2x64x16xf32>
      %10 = tpu.transpose %9, [0, 2, 1] : vector<2x64x16xf32> -> vector<2x16x64xf32>
      %c0_6 = arith.constant 0 : index
      %c2 = arith.constant 2 : index
      %c0_7 = arith.constant 0 : index
      %11 = vector.load %arg12[%c0_6, %c2, %c0_7] : memref<2x20x64xf32, #tpu.memory_space<vmem>>, vector<2x16x64xf32>
      tpu.vector_store %arg12[%c0_6, %c2, %c0_7], %10 {strides = array<i32>} : memref<2x20x64xf32, #tpu.memory_space<vmem>>, vector<2x16x64xf32>,
      %cst = arith.constant 0.000000e+00 : f32
      %12 = vector.broadcast %cst : f32 to vector<32x64xf32>
      %c0_8 = arith.constant 0 : index
      %c0_9 = arith.constant 0 : index
      %c0_10 = arith.constant 0 : index
      %13 = vector.load %arg12[%c0_8, %c0_9, %c0_10] : memref<2x20x64xf32, #tpu.memory_space<vmem>>, vector<2x16x64xf32>
      %14 = vector.shape_cast %13 : vector<2x16x64xf32> to vector<32x64xf32>
      %c0_11 = arith.constant 0 : index
      %c0_12 = arith.constant 0 : index
      %c0_13 = arith.constant 0 : index
      %15 = vector.load %arg3[%c0_11, %c0_12, %c0_13] : memref<3x64x64xf32, #tpu.memory_space<vmem>>, vector<1x64x64xf32>
      %16 = vector.shape_cast %15 : vector<1x64x64xf32> to vector<64x64xf32>
      %cst_14 = arith.constant dense<0.000000e+00> : vector<32x64xf32>
      %17 = tpu.matmul %14, %16, %cst_14 {dimension_numbers = #tpu.dot_dimension_numbers<[1], [0], [0], [1], [0, 0, 1, 1], [], []>} : vector<32x64xf32>, vector<64x64xf32>, vector<32x64xf32> -> vector<32x64xf32>
      %18 = arith.addf %12, %17 : vector<32x64xf32>
      %c0_15 = arith.constant 0 : index
      %c2_16 = arith.constant 2 : index
      %c0_17 = arith.constant 0 : index
      %19 = vector.load %arg12[%c0_15, %c2_16, %c0_17] : memref<2x20x64xf32, #tpu.memory_space<vmem>>, vector<2x16x64xf32>
      %20 = vector.shape_cast %19 : vector<2x16x64xf32> to vector<32x64xf32>
      %c1 = arith.constant 1 : index
      %c0_18 = arith.constant 0 : index
      %c0_19 = arith.constant 0 : index
      %21 = vector.load %arg3[%c1, %c0_18, %c0_19] : memref<3x64x64xf32, #tpu.memory_space<vmem>>, vector<1x64x64xf32>
      %22 = vector.shape_cast %21 : vector<1x64x64xf32> to vector<64x64xf32>
      %cst_20 = arith.constant dense<0.000000e+00> : vector<32x64xf32>
      %23 = tpu.matmul %20, %22, %cst_20 {dimension_numbers = #tpu.dot_dimension_numbers<[1], [0], [0], [1], [0, 0, 1, 1], [], []>} : vector<32x64xf32>, vector<64x64xf32>, vector<32x64xf32> -> vector<32x64xf32>
      %24 = arith.addf %18, %23 : vector<32x64xf32>
      %c0_21 = arith.constant 0 : index
      %c4 = arith.constant 4 : index
      %c0_22 = arith.constant 0 : index
      %25 = vector.load %arg12[%c0_21, %c4, %c0_22] : memref<2x20x64xf32, #tpu.memory_space<vmem>>, vector<2x16x64xf32>
      %26 = vector.shape_cast %25 : vector<2x16x64xf32> to vector<32x64xf32>
      %c2_23 = arith.constant 2 : index
      %c0_24 = arith.constant 0 : index
      %c0_25 = arith.constant 0 : index
      %27 = vector.load %arg3[%c2_23, %c0_24, %c0_25] : memref<3x64x64xf32, #tpu.memory_space<vmem>>, vector<1x64x64xf32>
      %28 = vector.shape_cast %27 : vector<1x64x64xf32> to vector<64x64xf32>
      %cst_26 = arith.constant dense<0.000000e+00> : vector<32x64xf32>
      %29 = tpu.matmul %26, %28, %cst_26 {dimension_numbers = #tpu.dot_dimension_numbers<[1], [0], [0], [1], [0, 0, 1, 1], [], []>} : vector<32x64xf32>, vector<64x64xf32>, vector<32x64xf32> -> vector<32x64xf32>
      %30 = arith.addf %24, %29 : vector<32x64xf32>
      %c0_27 = arith.constant 0 : index
      %c0_28 = arith.constant 0 : index
      %31 = vector.load %arg4[%c0_27, %c0_28] : memref<1x64xf32, #tpu.memory_space<vmem>>, vector<1x64xf32>
      %32 = vector.broadcast %31 : vector<1x64xf32> to vector<32x64xf32>
      %33 = arith.addf %30, %32 : vector<32x64xf32>
      %34 = vector.shape_cast %33 : vector<32x64xf32> to vector<2x16x64xf32>
      %35 = arith.index_cast %arg1 : i32 to index
      %c0_29 = arith.constant 0 : index
      %c0_30 = arith.constant 0 : index
      %c0_31 = arith.constant 0 : index
      %36 = vector.load %arg13[%35, %c0_29, %c0_30, %c0_31] : memref<1x2x16x64xf32, #tpu.memory_space<vmem>>, vector<1x2x16x64xf32>
      %37 = vector.shape_cast %36 : vector<1x2x16x64xf32> to vector<2x16x64xf32>
      %38 = vector.shape_cast %34 : vector<2x16x64xf32> to vector<1x2x16x64xf32>
      tpu.vector_store %arg13[%35, %c0_29, %c0_30, %c0_31], %38 {strides = array<i32>} : memref<1x2x16x64xf32, #tpu.memory_space<vmem>>, vector<1x2x16x64xf32>,
      %39 = vector.shape_cast %33 : vector<32x64xf32> to vector<2x16x64xf32>
      %c0_32 = arith.constant 0 : index
      %c2_33 = arith.constant 2 : index
      %c0_34 = arith.constant 0 : index
      %40 = vector.load %arg12[%c0_32, %c2_33, %c0_34] : memref<2x20x64xf32, #tpu.memory_space<vmem>>, vector<2x16x64xf32>
      tpu.vector_store %arg12[%c0_32, %c2_33, %c0_34], %39 {strides = array<i32>} : memref<2x20x64xf32, #tpu.memory_space<vmem>>, vector<2x16x64xf32>,
      %cst_35 = arith.constant 0.000000e+00 : f32
      %41 = vector.broadcast %cst_35 : f32 to vector<32x64xf32>
      %c0_36 = arith.constant 0 : index
      %c0_37 = arith.constant 0 : index
      %c0_38 = arith.constant 0 : index
      %42 = vector.load %arg12[%c0_36, %c0_37, %c0_38] : memref<2x20x64xf32, #tpu.memory_space<vmem>>, vector<2x16x64xf32>
      %43 = vector.shape_cast %42 : vector<2x16x64xf32> to vector<32x64xf32>
      %c0_39 = arith.constant 0 : index
      %c0_40 = arith.constant 0 : index
      %c0_41 = arith.constant 0 : index
      %44 = vector.load %arg5[%c0_39, %c0_40, %c0_41] : memref<3x64x64xf32, #tpu.memory_space<vmem>>, vector<1x64x64xf32>
      %45 = vector.shape_cast %44 : vector<1x64x64xf32> to vector<64x64xf32>
      %cst_42 = arith.constant dense<0.000000e+00> : vector<32x64xf32>
      %46 = tpu.matmul %43, %45, %cst_42 {dimension_numbers = #tpu.dot_dimension_numbers<[1], [0], [0], [1], [0, 0, 1, 1], [], []>} : vector<32x64xf32>, vector<64x64xf32>, vector<32x64xf32> -> vector<32x64xf32>
      %47 = arith.addf %41, %46 : vector<32x64xf32>
      %c0_43 = arith.constant 0 : index
      %c2_44 = arith.constant 2 : index
      %c0_45 = arith.constant 0 : index
      %48 = vector.load %arg12[%c0_43, %c2_44, %c0_45] : memref<2x20x64xf32, #tpu.memory_space<vmem>>, vector<2x16x64xf32>
      %49 = vector.shape_cast %48 : vector<2x16x64xf32> to vector<32x64xf32>
      %c1_46 = arith.constant 1 : index
      %c0_47 = arith.constant 0 : index
      %c0_48 = arith.constant 0 : index
      %50 = vector.load %arg5[%c1_46, %c0_47, %c0_48] : memref<3x64x64xf32, #tpu.memory_space<vmem>>, vector<1x64x64xf32>
      %51 = vector.shape_cast %50 : vector<1x64x64xf32> to vector<64x64xf32>
      %cst_49 = arith.constant dense<0.000000e+00> : vector<32x64xf32>
      %52 = tpu.matmul %49, %51, %cst_49 {dimension_numbers = #tpu.dot_dimension_numbers<[1], [0], [0], [1], [0, 0, 1, 1], [], []>} : vector<32x64xf32>, vector<64x64xf32>, vector<32x64xf32> -> vector<32x64xf32>
      %53 = arith.addf %47, %52 : vector<32x64xf32>
      %c0_50 = arith.constant 0 : index
      %c4_51 = arith.constant 4 : index
      %c0_52 = arith.constant 0 : index
      %54 = vector.load %arg12[%c0_50, %c4_51, %c0_52] : memref<2x20x64xf32, #tpu.memory_space<vmem>>, vector<2x16x64xf32>
      %55 = vector.shape_cast %54 : vector<2x16x64xf32> to vector<32x64xf32>
      %c2_53 = arith.constant 2 : index
      %c0_54 = arith.constant 0 : index
      %c0_55 = arith.constant 0 : index
      %56 = vector.load %arg5[%c2_53, %c0_54, %c0_55] : memref<3x64x64xf32, #tpu.memory_space<vmem>>, vector<1x64x64xf32>
      %57 = vector.shape_cast %56 : vector<1x64x64xf32> to vector<64x64xf32>
      %cst_56 = arith.constant dense<0.000000e+00> : vector<32x64xf32>
      %58 = tpu.matmul %55, %57, %cst_56 {dimension_numbers = #tpu.dot_dimension_numbers<[1], [0], [0], [1], [0, 0, 1, 1], [], []>} : vector<32x64xf32>, vector<64x64xf32>, vector<32x64xf32> -> vector<32x64xf32>
      %59 = arith.addf %53, %58 : vector<32x64xf32>
      %c0_57 = arith.constant 0 : index
      %c0_58 = arith.constant 0 : index
      %60 = vector.load %arg6[%c0_57, %c0_58] : memref<1x64xf32, #tpu.memory_space<vmem>>, vector<1x64xf32>
      %61 = vector.broadcast %60 : vector<1x64xf32> to vector<32x64xf32>
      %62 = arith.addf %59, %61 : vector<32x64xf32>
      %cst_59 = arith.constant 0.000000e+00 : f32
      %63 = vector.broadcast %cst_59 : f32 to vector<32x64xf32>
      %64 = arith.maximumf %62, %63 : vector<32x64xf32>
      %65 = vector.shape_cast %64 : vector<32x64xf32> to vector<2x16x64xf32>
      %c0_60 = arith.constant 0 : index
      %c2_61 = arith.constant 2 : index
      %c0_62 = arith.constant 0 : index
      %66 = vector.load %arg12[%c0_60, %c2_61, %c0_62] : memref<2x20x64xf32, #tpu.memory_space<vmem>>, vector<2x16x64xf32>
      tpu.vector_store %arg12[%c0_60, %c2_61, %c0_62], %65 {strides = array<i32>} : memref<2x20x64xf32, #tpu.memory_space<vmem>>, vector<2x16x64xf32>,
      %cst_63 = arith.constant 0.000000e+00 : f32
      %67 = vector.broadcast %cst_63 : f32 to vector<32x64xf32>
      %c0_64 = arith.constant 0 : index
      %c0_65 = arith.constant 0 : index
      %c0_66 = arith.constant 0 : index
      %68 = vector.load %arg12[%c0_64, %c0_65, %c0_66] : memref<2x20x64xf32, #tpu.memory_space<vmem>>, vector<2x16x64xf32>
      %69 = vector.shape_cast %68 : vector<2x16x64xf32> to vector<32x64xf32>
      %c0_67 = arith.constant 0 : index
      %c0_68 = arith.constant 0 : index
      %c0_69 = arith.constant 0 : index
      %70 = vector.load %arg7[%c0_67, %c0_68, %c0_69] : memref<3x64x64xf32, #tpu.memory_space<vmem>>, vector<1x64x64xf32>
      %71 = vector.shape_cast %70 : vector<1x64x64xf32> to vector<64x64xf32>
      %cst_70 = arith.constant dense<0.000000e+00> : vector<32x64xf32>
      %72 = tpu.matmul %69, %71, %cst_70 {dimension_numbers = #tpu.dot_dimension_numbers<[1], [0], [0], [1], [0, 0, 1, 1], [], []>} : vector<32x64xf32>, vector<64x64xf32>, vector<32x64xf32> -> vector<32x64xf32>
      %73 = arith.addf %67, %72 : vector<32x64xf32>
      %c0_71 = arith.constant 0 : index
      %c2_72 = arith.constant 2 : index
      %c0_73 = arith.constant 0 : index
      %74 = vector.load %arg12[%c0_71, %c2_72, %c0_73] : memref<2x20x64xf32, #tpu.memory_space<vmem>>, vector<2x16x64xf32>
      %75 = vector.shape_cast %74 : vector<2x16x64xf32> to vector<32x64xf32>
      %c1_74 = arith.constant 1 : index
      %c0_75 = arith.constant 0 : index
      %c0_76 = arith.constant 0 : index
      %76 = vector.load %arg7[%c1_74, %c0_75, %c0_76] : memref<3x64x64xf32, #tpu.memory_space<vmem>>, vector<1x64x64xf32>
      %77 = vector.shape_cast %76 : vector<1x64x64xf32> to vector<64x64xf32>
      %cst_77 = arith.constant dense<0.000000e+00> : vector<32x64xf32>
      %78 = tpu.matmul %75, %77, %cst_77 {dimension_numbers = #tpu.dot_dimension_numbers<[1], [0], [0], [1], [0, 0, 1, 1], [], []>} : vector<32x64xf32>, vector<64x64xf32>, vector<32x64xf32> -> vector<32x64xf32>
      %79 = arith.addf %73, %78 : vector<32x64xf32>
      %c0_78 = arith.constant 0 : index
      %c4_79 = arith.constant 4 : index
      %c0_80 = arith.constant 0 : index
      %80 = vector.load %arg12[%c0_78, %c4_79, %c0_80] : memref<2x20x64xf32, #tpu.memory_space<vmem>>, vector<2x16x64xf32>
      %81 = vector.shape_cast %80 : vector<2x16x64xf32> to vector<32x64xf32>
      %c2_81 = arith.constant 2 : index
      %c0_82 = arith.constant 0 : index
      %c0_83 = arith.constant 0 : index
      %82 = vector.load %arg7[%c2_81, %c0_82, %c0_83] : memref<3x64x64xf32, #tpu.memory_space<vmem>>, vector<1x64x64xf32>
      %83 = vector.shape_cast %82 : vector<1x64x64xf32> to vector<64x64xf32>
      %cst_84 = arith.constant dense<0.000000e+00> : vector<32x64xf32>
      %84 = tpu.matmul %81, %83, %cst_84 {dimension_numbers = #tpu.dot_dimension_numbers<[1], [0], [0], [1], [0, 0, 1, 1], [], []>} : vector<32x64xf32>, vector<64x64xf32>, vector<32x64xf32> -> vector<32x64xf32>
      %85 = arith.addf %79, %84 : vector<32x64xf32>
      %c0_85 = arith.constant 0 : index
      %c0_86 = arith.constant 0 : index
      %86 = vector.load %arg8[%c0_85, %c0_86] : memref<1x64xf32, #tpu.memory_space<vmem>>, vector<1x64xf32>
      %87 = vector.broadcast %86 : vector<1x64xf32> to vector<32x64xf32>
      %88 = arith.addf %85, %87 : vector<32x64xf32>
      %89 = vector.shape_cast %88 : vector<32x64xf32> to vector<2x16x64xf32>
      %90 = arith.index_cast %arg1 : i32 to index
      %c0_87 = arith.constant 0 : index
      %c0_88 = arith.constant 0 : index
      %c0_89 = arith.constant 0 : index
      %91 = vector.load %arg14[%90, %c0_87, %c0_88, %c0_89] : memref<1x2x16x64xf32, #tpu.memory_space<vmem>>, vector<1x2x16x64xf32>
      %92 = vector.shape_cast %91 : vector<1x2x16x64xf32> to vector<2x16x64xf32>
      %93 = vector.shape_cast %89 : vector<2x16x64xf32> to vector<1x2x16x64xf32>
      tpu.vector_store %arg14[%90, %c0_87, %c0_88, %c0_89], %93 {strides = array<i32>} : memref<1x2x16x64xf32, #tpu.memory_space<vmem>>, vector<1x2x16x64xf32>,
      %c0_90 = arith.constant 0 : index
      %c0_91 = arith.constant 0 : index
      %94 = vector.load %arg15[%c0_90, %c0_91] : memref<1x64xf32, #tpu.memory_space<vmem>>, vector<1x64xf32>
      %cst_92 = arith.constant dense<0.000000e+00> : vector<64xf32>
      %95 = vector.multi_reduction <add>, %88, %cst_92 [0] : vector<32x64xf32> to vector<64xf32>
      %96 = vector.shape_cast %95 : vector<64xf32> to vector<1x64xf32>
      %97 = arith.addf %94, %96 : vector<1x64xf32>
      %c0_93 = arith.constant 0 : index
      %c0_94 = arith.constant 0 : index
      %98 = vector.load %arg15[%c0_93, %c0_94] : memref<1x64xf32, #tpu.memory_space<vmem>>, vector<1x64xf32>
      tpu.vector_store %arg15[%c0_93, %c0_94], %97 {strides = array<i32>} : memref<1x64xf32, #tpu.memory_space<vmem>>, vector<1x64xf32>,
      %c0_95 = arith.constant 0 : index
      %c0_96 = arith.constant 0 : index
      %99 = vector.load %arg16[%c0_95, %c0_96] : memref<1x64xf32, #tpu.memory_space<vmem>>, vector<1x64xf32>
      %100 = arith.mulf %88, %88 : vector<32x64xf32>
      %cst_97 = arith.constant dense<0.000000e+00> : vector<64xf32>
      %101 = vector.multi_reduction <add>, %100, %cst_97 [0] : vector<32x64xf32> to vector<64xf32>
      %102 = vector.shape_cast %101 : vector<64xf32> to vector<1x64xf32>
      %103 = arith.addf %99, %102 : vector<1x64xf32>
      %c0_98 = arith.constant 0 : index
      %c0_99 = arith.constant 0 : index
      %104 = vector.load %arg16[%c0_98, %c0_99] : memref<1x64xf32, #tpu.memory_space<vmem>>, vector<1x64xf32>
      tpu.vector_store %arg16[%c0_98, %c0_99], %103 {strides = array<i32>} : memref<1x64xf32, #tpu.memory_space<vmem>>, vector<1x64xf32>,
    } else {
    }
    %c1_i32 = arith.constant 1 : i32
    %3 = arith.cmpi eq, %arg0, %c1_i32 : i32
    %4 = arith.extui %3 : i1 to i32
    %c0_i32_1 = arith.constant 0 : i32
    %5 = arith.cmpi ne, %4, %c0_i32_1 : i32
    scf.if %5 {
      %c0_i32_2 = arith.constant 0 : i32
      %6 = arith.cmpi eq, %arg1, %c0_i32_2 : i32
      %7 = arith.extui %6 : i1 to i32
      %c0_i32_3 = arith.constant 0 : i32
      %8 = arith.cmpi ne, %7, %c0_i32_3 : i32
      scf.if %8 {
        %c0_16 = arith.constant 0 : index
        %c0_17 = arith.constant 0 : index
        %28 = vector.load %arg15[%c0_16, %c0_17] : memref<1x64xf32, #tpu.memory_space<vmem>>, vector<1x64xf32>
        %cst_18 = arith.constant 3.200000e+01 : f32
        %29 = vector.broadcast %cst_18 : f32 to vector<1x64xf32>
        %30 = arith.divf %28, %29 : vector<1x64xf32>
        %c0_19 = arith.constant 0 : index
        %c0_20 = arith.constant 0 : index
        %31 = vector.load %arg16[%c0_19, %c0_20] : memref<1x64xf32, #tpu.memory_space<vmem>>, vector<1x64xf32>
        %cst_21 = arith.constant 3.200000e+01 : f32
        %32 = vector.broadcast %cst_21 : f32 to vector<1x64xf32>
        %33 = arith.divf %31, %32 : vector<1x64xf32>
        %34 = arith.mulf %30, %30 : vector<1x64xf32>
        %35 = arith.subf %33, %34 : vector<1x64xf32>
        %cst_22 = arith.constant 0.000000e+00 : f32
        %36 = vector.broadcast %cst_22 : f32 to vector<1x64xf32>
        %37 = arith.maximumf %35, %36 : vector<1x64xf32>
        %cst_23 = arith.constant 9.99999996E-13 : f32
        %38 = vector.broadcast %cst_23 : f32 to vector<1x64xf32>
        %39 = arith.addf %37, %38 : vector<1x64xf32>
        %40 = math.rsqrt %39 : vector<1x64xf32>
        %c0_24 = arith.constant 0 : index
        %c0_25 = arith.constant 0 : index
        %41 = vector.load %arg9[%c0_24, %c0_25] : memref<1x64xf32, #tpu.memory_space<vmem>>, vector<1x64xf32>
        %42 = arith.mulf %41, %40 : vector<1x64xf32>
        %c0_26 = arith.constant 0 : index
        %c0_27 = arith.constant 0 : index
        %43 = vector.load %arg17[%c0_26, %c0_27] : memref<1x64xf32, #tpu.memory_space<vmem>>, vector<1x64xf32>
        tpu.vector_store %arg17[%c0_26, %c0_27], %42 {strides = array<i32>} : memref<1x64xf32, #tpu.memory_space<vmem>>, vector<1x64xf32>,
        %c0_28 = arith.constant 0 : index
        %c0_29 = arith.constant 0 : index
        %44 = vector.load %arg10[%c0_28, %c0_29] : memref<1x64xf32, #tpu.memory_space<vmem>>, vector<1x64xf32>
        %45 = arith.mulf %30, %42 : vector<1x64xf32>
        %46 = arith.subf %44, %45 : vector<1x64xf32>
        %c0_30 = arith.constant 0 : index
        %c0_31 = arith.constant 0 : index
        %47 = vector.load %arg18[%c0_30, %c0_31] : memref<1x64xf32, #tpu.memory_space<vmem>>, vector<1x64xf32>
        tpu.vector_store %arg18[%c0_30, %c0_31], %46 {strides = array<i32>} : memref<1x64xf32, #tpu.memory_space<vmem>>, vector<1x64xf32>,
      } else {
      }
      %c0 = arith.constant 0 : index
      %c0_4 = arith.constant 0 : index
      %9 = vector.load %arg17[%c0, %c0_4] : memref<1x64xf32, #tpu.memory_space<vmem>>, vector<1x64xf32>
      %10 = vector.shape_cast %9 : vector<1x64xf32> to vector<1x1x64xf32>
      %c0_5 = arith.constant 0 : index
      %c0_6 = arith.constant 0 : index
      %11 = vector.load %arg18[%c0_5, %c0_6] : memref<1x64xf32, #tpu.memory_space<vmem>>, vector<1x64xf32>
      %12 = vector.shape_cast %11 : vector<1x64xf32> to vector<1x1x64xf32>
      %13 = arith.index_cast %arg1 : i32 to index
      %c0_7 = arith.constant 0 : index
      %c0_8 = arith.constant 0 : index
      %c0_9 = arith.constant 0 : index
      %14 = vector.load %arg14[%13, %c0_7, %c0_8, %c0_9] : memref<1x2x16x64xf32, #tpu.memory_space<vmem>>, vector<1x2x16x64xf32>
      %15 = vector.shape_cast %14 : vector<1x2x16x64xf32> to vector<2x16x64xf32>
      %16 = vector.broadcast %10 : vector<1x1x64xf32> to vector<2x16x64xf32>
      %17 = arith.mulf %15, %16 : vector<2x16x64xf32>
      %18 = vector.broadcast %12 : vector<1x1x64xf32> to vector<2x16x64xf32>
      %19 = arith.addf %17, %18 : vector<2x16x64xf32>
      %20 = arith.index_cast %arg1 : i32 to index
      %c0_10 = arith.constant 0 : index
      %c0_11 = arith.constant 0 : index
      %c0_12 = arith.constant 0 : index
      %21 = vector.load %arg13[%20, %c0_10, %c0_11, %c0_12] : memref<1x2x16x64xf32, #tpu.memory_space<vmem>>, vector<1x2x16x64xf32>
      %22 = vector.shape_cast %21 : vector<1x2x16x64xf32> to vector<2x16x64xf32>
      %23 = arith.addf %19, %22 : vector<2x16x64xf32>
      %cst = arith.constant 0.000000e+00 : f32
      %24 = vector.broadcast %cst : f32 to vector<2x16x64xf32>
      %25 = arith.maximumf %23, %24 : vector<2x16x64xf32>
      %26 = tpu.transpose %25, [0, 2, 1] : vector<2x16x64xf32> -> vector<2x64x16xf32>
      %c0_13 = arith.constant 0 : index
      %c0_14 = arith.constant 0 : index
      %c0_15 = arith.constant 0 : index
      %27 = vector.load %arg11[%c0_13, %c0_14, %c0_15] : memref<2x64x16xf32, #tpu.memory_space<vmem>>, vector<2x64x16xf32>
      tpu.vector_store %arg11[%c0_13, %c0_14, %c0_15], %26 {strides = array<i32>} : memref<2x64x16xf32, #tpu.memory_space<vmem>>, vector<2x64x16xf32>,
    } else {
    }
    return
  }
  func.func @transform_0(%arg0: i32, %arg1: i32) -> (i32, i32, i32) {
    %c1_i32 = arith.constant 1 : i32
    %0 = arith.subi %c1_i32, %arg0 : i32
    %1 = arith.muli %arg1, %0 : i32
    %c0_i32 = arith.constant 0 : i32
    %c0_i32_0 = arith.constant 0 : i32
    %c0_i32_1 = arith.constant 0 : i32
    return %1, %c0_i32, %c0_i32_0 : i32, i32, i32
  }
  func.func @transform_1(%arg0: i32, %arg1: i32) -> (i32, i32, i32) {
    %c0_i32 = arith.constant 0 : i32
    %c0_i32_0 = arith.constant 0 : i32
    %c0_i32_1 = arith.constant 0 : i32
    %c0_i32_2 = arith.constant 0 : i32
    return %c0_i32, %c0_i32_0, %c0_i32_1 : i32, i32, i32
  }
  func.func @transform_2(%arg0: i32, %arg1: i32) -> (i32, i32) {
    %c0_i32 = arith.constant 0 : i32
    %c0_i32_0 = arith.constant 0 : i32
    %c0_i32_1 = arith.constant 0 : i32
    return %c0_i32, %c0_i32_0 : i32, i32
  }
  func.func @transform_3(%arg0: i32, %arg1: i32) -> (i32, i32, i32) {
    %c0_i32 = arith.constant 0 : i32
    %c0_i32_0 = arith.constant 0 : i32
    %c0_i32_1 = arith.constant 0 : i32
    %c0_i32_2 = arith.constant 0 : i32
    return %c0_i32, %c0_i32_0, %c0_i32_1 : i32, i32, i32
  }
  func.func @transform_4(%arg0: i32, %arg1: i32) -> (i32, i32) {
    %c0_i32 = arith.constant 0 : i32
    %c0_i32_0 = arith.constant 0 : i32
    %c0_i32_1 = arith.constant 0 : i32
    return %c0_i32, %c0_i32_0 : i32, i32
  }
  func.func @transform_5(%arg0: i32, %arg1: i32) -> (i32, i32, i32) {
    %c0_i32 = arith.constant 0 : i32
    %c0_i32_0 = arith.constant 0 : i32
    %c0_i32_1 = arith.constant 0 : i32
    %c0_i32_2 = arith.constant 0 : i32
    return %c0_i32, %c0_i32_0, %c0_i32_1 : i32, i32, i32
  }
  func.func @transform_6(%arg0: i32, %arg1: i32) -> (i32, i32) {
    %c0_i32 = arith.constant 0 : i32
    %c0_i32_0 = arith.constant 0 : i32
    %c0_i32_1 = arith.constant 0 : i32
    return %c0_i32, %c0_i32_0 : i32, i32
  }
  func.func @transform_7(%arg0: i32, %arg1: i32) -> (i32, i32) {
    %c0_i32 = arith.constant 0 : i32
    %c0_i32_0 = arith.constant 0 : i32
    %c0_i32_1 = arith.constant 0 : i32
    return %c0_i32, %c0_i32_0 : i32, i32
  }
  func.func @transform_8(%arg0: i32, %arg1: i32) -> (i32, i32) {
    %c0_i32 = arith.constant 0 : i32
    %c0_i32_0 = arith.constant 0 : i32
    %c0_i32_1 = arith.constant 0 : i32
    return %c0_i32, %c0_i32_0 : i32, i32
  }
  func.func @transform_9(%arg0: i32, %arg1: i32) -> (i32, i32, i32) {
    %0 = arith.muli %arg1, %arg0 : i32
    %c0_i32 = arith.constant 0 : i32
    %c0_i32_0 = arith.constant 0 : i32
    %c0_i32_1 = arith.constant 0 : i32
    return %0, %c0_i32, %c0_i32_0 : i32, i32, i32
  }
}

</mosaic_0001>

<bundles_post_ra>
// kernel: tpu_custom_call.1
= control target key start
LH: loop header
LB: loop body
LE: loop exit
PB: predicated region body
PF: predicated region fallthrough
CT: control target
= control target key end

     0   :  { %14 = vsyncpa [#allocation10], 0  ;;  %s1964_s0 = inlined_call_operand.vmem [shape: f32[2,64,16], index: 0, kind: input, shape index: {}]   ;;  %s1965_s1 = inlined_call_operand.hbm [shape: f32[3,64,64], index: 1, kind: input, shape index: {}]   ;;  %s1966_s2 = inlined_call_operand.vmem [shape: f32[1,64], index: 2, kind: input, shape index: {}]   ;;  %s1967_s3 = inlined_call_operand.hbm [shape: f32[3,64,64], index: 3, kind: input, shape index: {}]   ;;  %s1968_s4 = inlined_call_operand.vmem [shape: f32[1,64], index: 4, kind: input, shape index: {}]   ;;  %s1969_s5 = inlined_call_operand.hbm [shape: f32[3,64,64], index: 5, kind: input, shape index: {}]   ;;  %s1970_s6 = inlined_call_operand.vmem [shape: f32[1,64], index: 6, kind: input, shape index: {}]   ;;  %s1971_s7 = inlined_call_operand.vmem [shape: f32[1,64], index: 7, kind: input, shape index: {}]   ;;  %s1972_s8 = inlined_call_operand.vmem [shape: f32[1,64], index: 8, kind: input, shape index: {}]   ;;  %s1973_s9 = inlined_call_operand.vmem [shape: f32[2,64,16], index: 9, kind: output, shape index: {}]  }
   0x1   :  { %15 = vsyncpa [#allocation12], 0  ;;  %s1686_s30 = smov 0   ;;  %s1688_s10 = smov 0  }
   0x2   :  { %s1690_s11 = smov 0  }
   0x3 LB: > { %s1368_s12 = sadd.s32 4294967295, %s1627_s11   ;;  %p1370_p0 = scmp.ge.s32.totalorder %s1627_s11, 1  ;;  %s1627_s11 = sphi %s1690_s11, %s21_s11   ;;  %s1623_s10 = sphi %s1688_s10, %s1978_s10   ;;  %s1619_s30 = sphi %s1686_s30, %s1977_s30  }
   0x4   : > { %p264_p1 = scmp.lt.s32.totalorder %s1627_s11, 3  ;;  %p1704_p2 = scmp.eq.s32.totalorder %s1368_s12, 0 }
   0x5   : > { %s292_s16 = sshll.u32 %s1967_s3, 4  ;;  %s1629_s18 = smov [#allocation11]   ;;  %s293_s16 = int_to_ptr.hbm [resolvable:$true] %s292_s16 }
   0x6   : > { %p1711_p3 = pnand %p1370_p0, %p264_p1  ;;  %s294_s19 = sshll.u32 %s1629_s18, 4  ;;  %s295_s19 = int_to_ptr.vmem [resolvable:$true] %s294_s19 }
   0x7   : > { %s33_s21 = sadd.s32 1, %s1623_s10  ;;  %s1630_s22 = smov 128  }
   0x8   : > { %p1450_p4 = pneg %p1711_p3  ;;  %p35_p6 = scmp.ge.s32.totalorder %s33_s21, 2 }
   0x9   : > { %s1631_s23 = smov 8   ;;  %s275_s26 = sshll.u32 %s1965_s1, 4  ;;  %s276_s26 = int_to_ptr.hbm [resolvable:$true] %s275_s26 }
   0xa   : > { %p1719_p5 = pnand %p1704_p2, %p1450_p4  ;;  %s1980_s21 = smov (%p35_p6, %s33_s21), 0 }
   0xb   : > { %s1632_s27 = smov [#allocation9]   ;;  %s309_s14 = sshll.u32 %s1969_s5, 4  ;;  %s310_s14 = int_to_ptr.hbm [resolvable:$true] %s309_s14 }
   0xc   : > { %1456 = dma.hbm_to_vmem [thread:$0]  (!%p1719_p5), %s293_s16, 3072, %s295_s19, [#allocation12], %s1630_s22, %s1630_s22, %s1631_s23  }
   0xd   : > { %s277_s28 = sshll.u32 %s1632_s27, 4  ;;  %s1633_s15 = smov [#allocation13]   ;;  %s278_s28 = int_to_ptr.vmem [resolvable:$true] %s277_s28 }
   0xe   : > { %1453 = dma.hbm_to_vmem [thread:$0]  (!%p1719_p5), %s276_s26, 3072, %s278_s28, [#allocation10], %s1630_s22, %s1630_s22, %s1631_s23  }
   0xf   : > { %s311_s18 = sshll.u32 %s1633_s15, 4  ;;  %350 = sbr.rel (%p1711_p3) target bundleno = 994 (0x3e2), region = 56  ;;  %s312_s18 = int_to_ptr.vmem [resolvable:$true] %s311_s18 }
  0x10   : > { %1459 = dma.hbm_to_vmem [thread:$0]  (!%p1719_p5), %s310_s14, 3072, %s312_s18, [#allocation12], %s1630_s22, %s1630_s22, %s1631_s23  }
  0x14   : > { %1610 = dma.done.wait (%p1704_p2), [#allocation10], 3072  }
  0x15   : > { %1612 = vsyncadd (%p1704_p2), [#allocation10], 4294964224 }
  0x16   : > { %1614 = dma.done.wait (%p1704_p2), [#allocation12], 6144  }
  0x17   : > { %1616 = vsyncadd (%p1704_p2), [#allocation12], 4294961152  ;;  %p1380_p7 = scmp.ne.s32.totalorder %s1619_s30, 0 }
  0x19   : > { %425 = sbr.rel (%p1380_p7) target bundleno = 699 (0x2bb), region = 72 }
  0x1e   : > { %v446_v0 = vld [vmem:[%s1964_s0 + $0x40] sm:$0xff]  ;;  %v447_v2 = vld [vmem:[%s1964_s0 + $0x48] sm:$0xff]  ;;  %v448_v4 = vld [vmem:[%s1964_s0 + $0x50] sm:$0xff]  ;;  %vm430_vm0 = vcmask 517120   ;;  %v1634_v24 = vmov 0.0   ;;  %vm518_vm1 = vcmask 523264  }
  0x1f   : > { %v438_v1 = vld [vmem:[%s1964_s0] sm:$0xff]  ;;  %486 = vxpose.xlu0.b32.start [1/8] (short) (narrow) %v446_v0, 16  ;;  %v439_v3 = vld [vmem:[%s1964_s0 + $0x8] sm:$0xff]  ;;  %v440_v5 = vld [vmem:[%s1964_s0 + $0x10] sm:$0xff]  ;;  %431 = vst.msk [vmem:[#allocation2] sm:$0x3] %vm430_vm0, %v1634_v24 }
  0x20   : > { %454 = vxpose.xlu1.b32.start [1/8] (short) (narrow) %v438_v1, 16  ;;  %v449_v6 = vld [vmem:[%s1964_s0 + $0x58] sm:$0xff]  ;;  %v547_v8 = vld [vmem:[#allocation9 + $0x78] sm:$0xff]  ;;  %v546_v9 = vld [vmem:[#allocation9 + $0x70] sm:$0xff]  ;;  %432 = vst.msk [vmem:[#allocation2 + $0x18] sm:$0x3] %vm430_vm0, %v1634_v24 }
  0x21   : > { %v441_v7 = vld [vmem:[%s1964_s0 + $0x18] sm:$0xff]  ;;  %1422 = vmatpush.msra.mxu1 %v547_v8  ;;  %568 = vmatpush.msra.mxu0 %v547_v8  ;;  %v450_v12 = vld [vmem:[%s1964_s0 + $0x60] sm:$0xff]  ;;  %v451_v14 = vld [vmem:[%s1964_s0 + $0x68] sm:$0xff]  ;;  %433 = vst.msk [vmem:[#allocation2 + $0x12] sm:$0x3] %vm430_vm0, %v1634_v24  ;;  %vm435_vm2 = vcmask 516096  }
  0x22   : > { %v545_v10 = vld [vmem:[#allocation9 + $0x68] sm:$0xff]  ;;  %v544_v11 = vld [vmem:[#allocation9 + $0x60] sm:$0xff]  ;;  %v443_v15 = vld [vmem:[%s1964_s0 + $0x28] sm:$0xff]  ;;  %434 = vst.msk [vmem:[#allocation2 + $0x2a] sm:$0x3] %vm430_vm0, %v1634_v24 }
  0x23   : > { %1423 = vmatpush.msra.mxu1 %v546_v9  ;;  %569 = vmatpush.msra.mxu0 %v546_v9  ;;  %v442_v13 = vld [vmem:[%s1964_s0 + $0x20] sm:$0xff]  ;;  %v452_v16 = vld [vmem:[%s1964_s0 + $0x70] sm:$0xff]  ;;  %v453_v18 = vld [vmem:[%s1964_s0 + $0x78] sm:$0xff]  ;;  %436 = vst.msk [vmem:[#allocation5] sm:$0x1] %vm435_vm2, %v1634_v24 }
  0x24   : > { %v444_v17 = vld [vmem:[%s1964_s0 + $0x30] sm:$0xff]  ;;  %v445_v19 = vld [vmem:[%s1964_s0 + $0x38] sm:$0xff]  ;;  %v542_v22 = vld [vmem:[#allocation9 + $0x50] sm:$0xff]  ;;  %437 = vst.msk [vmem:[#allocation6] sm:$0x1] %vm435_vm2, %v1634_v24 }
  0x25   : > { %1424 = vmatpush.msra.mxu1 %v545_v10  ;;  %570 = vmatpush.msra.mxu0 %v545_v10  ;;  %v543_v20 = vld [vmem:[#allocation9 + $0x58] sm:$0xff]  ;;  %v641_v23 = vld [vmem:[#allocation9 + $0xb0] sm:$0xff]  ;;  %v541_v25 = vld [vmem:[#allocation9 + $0x48] sm:$0xff] }
  0x26   : > { %v642_v21 = vld [vmem:[#allocation9 + $0xb8] sm:$0xff]  ;;  %v640_v26 = vld [vmem:[#allocation9 + $0xa8] sm:$0xff]  ;;  %v540_v27 = vld [vmem:[#allocation9 + $0x40] sm:$0xff] }
  0x27   : > { %487 = vxpose.xlu0.b32.cont [2/8] (short) (narrow) %v447_v2, 16  ;;  %1425 = vmatpush.msra.mxu1 %v544_v11  ;;  %v639_v28 = vld [vmem:[#allocation9 + $0xa0] sm:$0xff]  ;;  %v534_v29 = vld [vmem:[#allocation9 + $0x38] sm:$0xff]  ;;  %v533_v31 = vld [vmem:[#allocation9 + $0x30] sm:$0xff] }
  0x28   : > { %455 = vxpose.xlu1.b32.cont [2/8] (short) (narrow) %v439_v3, 16  ;;  %571 = vmatpush.msra.mxu0 %v544_v11  ;;  %v638_v30 = vld [vmem:[#allocation9 + $0x98] sm:$0xff]  ;;  %v637_v32 = vld [vmem:[#allocation9 + $0x90] sm:$0xff]  ;;  %v532_v33 = vld [vmem:[#allocation9 + $0x28] sm:$0xff] }
  0x29   : > { %1426 = vmatpush.msra.mxu1 %v543_v20  ;;  %663 = vmatpush.msra.mxu2 %v642_v21  ;;  %v636_v34 = vld [vmem:[#allocation9 + $0x88] sm:$0xff]  ;;  %v531_v35 = vld [vmem:[#allocation9 + $0x20] sm:$0xff]  ;;  %v530_v37 = vld [vmem:[#allocation9 + $0x18] sm:$0xff] }
  0x2a   : > { %572 = vmatpush.msra.mxu0 %v543_v20  ;;  %v635_v36 = vld [vmem:[#allocation9 + $0x80] sm:$0xff]  ;;  %v529_v38 = vld [vmem:[#allocation9 + $0x10] sm:$0xff]  ;;  %v528_v39 = vld [vmem:[#allocation9 + $0x8] sm:$0xff] }
  0x2b   : > { %1427 = vmatpush.msra.mxu1 %v542_v22  ;;  %664 = vmatpush.msra.mxu2 %v641_v23  ;;  %v527_v40 = vld [vmem:[#allocation9] sm:$0xff]  ;;  %v825_v57 = vld [vmem:[#allocation11 + $0xb8] sm:$0xff]  ;;  %v824_v58 = vld [vmem:[#allocation11 + $0xb0] sm:$0xff] }
  0x2c   : > { %573 = vmatpush.msra.mxu0 %v542_v22  ;;  %v823_v59 = vld [vmem:[#allocation11 + $0xa8] sm:$0xff]  ;;  %v730_v60 = vld [vmem:[#allocation11 + $0x78] sm:$0xff]  ;;  %v729_v62 = vld [vmem:[#allocation11 + $0x70] sm:$0xff] }
  0x2d   : > { %1428 = vmatpush.msra.mxu1 %v541_v25  ;;  %665 = vmatpush.msra.mxu2 %v640_v26  ;;  %v717_v61 = vld [vmem:[#allocation11 + $0x38] sm:$0xff]  ;;  %v716_v63 = vld [vmem:[#allocation11 + $0x30] sm:$0xff]  ;;  %v728_v0 = vld [vmem:[#allocation11 + $0x68] sm:$0xff] }
  0x2e   : > { %574 = vmatpush.msra.mxu0 %v541_v25  ;;  %751 = vmatpush.msra.mxu3 %v730_v60  ;;  %v715_v1 = vld [vmem:[#allocation11 + $0x28] sm:$0xff]  ;;  %v727_v2 = vld [vmem:[#allocation11 + $0x60] sm:$0xff]  ;;  %v725_v8 = vld [vmem:[#allocation11 + $0x50] sm:$0xff] }
  0x2f   : > { %488 = vxpose.xlu0.b32.cont [3/8] (short) (narrow) %v448_v4, 16  ;;  %1429 = vmatpush.msra.mxu1 %v540_v27  ;;  %v714_v3 = vld [vmem:[#allocation11 + $0x20] sm:$0xff]  ;;  %v712_v9 = vld [vmem:[#allocation11 + $0x10] sm:$0xff]  ;;  %v724_v10 = vld [vmem:[#allocation11 + $0x48] sm:$0xff] }
  0x30   : > { %456 = vxpose.xlu1.b32.cont [3/8] (short) (narrow) %v440_v5, 16  ;;  %666 = vmatpush.msra.mxu2 %v639_v28  ;;  %v822_v4 = vld [vmem:[#allocation11 + $0xa0] sm:$0xff]  ;;  %v821_v5 = vld [vmem:[#allocation11 + $0x98] sm:$0xff]  ;;  %v711_v11 = vld [vmem:[#allocation11 + $0x8] sm:$0xff] }
  0x31   : > { %575 = vmatpush.msra.mxu0 %v540_v27  ;;  %609 = vmatpush.msrb.mxu1 %v534_v29  ;;  %v1498_v23 = vld [vmem:[%s1966_s2] ss:$0 sm:$0xff]  ;;  %v908_v60 = vld [vmem:[#allocation13 + $0x60] sm:$0xff] }
  0x32   : > { %667 = vmatpush.msra.mxu2 %v638_v30  ;;  %752 = vmatpush.msra.mxu3 %v729_v62  ;;  %v907_v62 = vld [vmem:[#allocation13 + $0x58] sm:$0xff] }
  0x33   : > { %610 = vmatpush.msrb.mxu1 %v533_v31  ;;  %792 = vmatpush.msrb.mxu0 %v717_v61  ;;  %v896_v61 = vld [vmem:[#allocation13 + $0x28] sm:$0xff] }
  0x34   : > { %668 = vmatpush.msra.mxu2 %v637_v32  ;;  %753 = vmatpush.msra.mxu3 %v728_v0  ;;  %v906_v0 = vld [vmem:[#allocation13 + $0x50] sm:$0xff] }
  0x35   : > { %611 = vmatpush.msrb.mxu1 %v532_v33  ;;  %793 = vmatpush.msrb.mxu0 %v716_v63  ;;  %v895_v63 = vld [vmem:[#allocation13 + $0x20] sm:$0xff] }
  0x36   : > { %669 = vmatpush.msra.mxu2 %v636_v34  ;;  %754 = vmatpush.msra.mxu3 %v727_v2  ;;  %v894_v2 = vld [vmem:[#allocation13 + $0x18] sm:$0xff] }
  0x37   : > { %489 = vxpose.xlu0.b32.cont [4/8] (short) (narrow) %v449_v6, 16  ;;  %612 = vmatpush.msrb.mxu1 %v531_v35  ;;  %v726_v6 = vld [vmem:[#allocation11 + $0x58] sm:$0xff] }
  0x38   : > { %457 = vxpose.xlu1.b32.cont [4/8] (short) (narrow) %v441_v7, 16  ;;  %670 = vmatpush.msra.mxu2 %v635_v36  ;;  %v713_v7 = vld [vmem:[#allocation11 + $0x18] sm:$0xff] }
  0x39   : > { %613 = vmatpush.msrb.mxu1 %v530_v37  ;;  %794 = vmatpush.msrb.mxu0 %v715_v1  ;;  %v1006_v1 = vld [vmem:[#allocation13 + $0xb8] sm:$0xff] }
  0x3a   : > { %755 = vmatpush.msra.mxu3 %v726_v6  ;;  %v1004_v6 = vld [vmem:[#allocation13 + $0xa8] sm:$0xff] }
  0x3b   : > { %614 = vmatpush.msrb.mxu1 %v529_v38  ;;  %795 = vmatpush.msrb.mxu0 %v714_v3  ;;  %v911_v38 = vld [vmem:[#allocation13 + $0x78] sm:$0xff]  ;;  %v905_v3 = vld [vmem:[#allocation13 + $0x48] sm:$0xff] }
  0x3c   : > { %756 = vmatpush.msra.mxu3 %v725_v8  ;;  %932 = vmatpush.msrb.mxu2 %v911_v38  ;;  %v904_v8 = vld [vmem:[#allocation13 + $0x40] sm:$0xff] }
  0x3d   : > { %615 = vmatpush.msrb.mxu1 %v528_v39  ;;  %796 = vmatpush.msrb.mxu0 %v713_v7  ;;  %v910_v39 = vld [vmem:[#allocation13 + $0x70] sm:$0xff]  ;;  %v892_v7 = vld [vmem:[#allocation13 + $0x8] sm:$0xff] }
  0x3e   : > { %757 = vmatpush.msra.mxu3 %v724_v10  ;;  %933 = vmatpush.msrb.mxu2 %v910_v39  ;;  %v1003_v10 = vld [vmem:[#allocation13 + $0xa0] sm:$0xff] }
  0x3f   : > { %490 = vxpose.xlu0.b32.cont [5/8] (short) (narrow) %v450_v12, 16  ;;  %616 = vmatpush.msrb.mxu1 %v527_v40  ;;  %v723_v12 = vld [vmem:[#allocation11 + $0x40] sm:$0xff]  ;;  %v898_v40 = vld [vmem:[#allocation13 + $0x38] sm:$0xff] }
  0x40   : > { %458 = vxpose.xlu1.b32.cont [5/8] (short) (narrow) %v442_v13, 16  ;;  %797 = vmatpush.msrb.mxu0 %v712_v9  ;;  %v710_v13 = vld [vmem:[#allocation11] sm:$0xff] }
  0x41   : > { %758 = vmatpush.msra.mxu3 %v723_v12  ;;  %v891_v9 = vld [vmem:[#allocation13] sm:$0xff]  ;;  %v1001_v12 = vld [vmem:[#allocation13 + $0x90] sm:$0xff] }
  0x42   : > { %798 = vmatpush.msrb.mxu0 %v711_v11  ;;  %v1002_v11 = vld [vmem:[#allocation13 + $0x98] sm:$0xff] }
  0x43   : > { %973 = vmatpush.msrb.mxu3 %v898_v40 }
  0x44   : > { %799 = vmatpush.msrb.mxu0 %v710_v13  ;;  %v1000_v13 = vld [vmem:[#allocation13 + $0x88] sm:$0xff] }
  0x47   : > { %491 = vxpose.xlu0.b32.cont [6/8] (short) (narrow) %v451_v14, 16 }
  0x48   : > { %459 = vxpose.xlu1.b32.cont [6/8] (short) (narrow) %v443_v15, 16  ;;  %v820_v15 = vld [vmem:[#allocation11 + $0x90] sm:$0xff] }
  0x4f   : > { %492 = vxpose.xlu0.b32.cont [7/8] (short) (narrow) %v452_v16, 16  ;;  %v819_v16 = vld [vmem:[#allocation11 + $0x88] sm:$0xff] }
  0x50   : > { %460 = vxpose.xlu1.b32.cont [7/8] (short) (narrow) %v444_v17, 16  ;;  %v818_v17 = vld [vmem:[#allocation11 + $0x80] sm:$0xff] }
  0x57   : > { %493 = vxpose.xlu0.b32.end [8/8] (short) (narrow) %v453_v18, 16 }
  0x58   : > { %461 = vxpose.xlu1.b32.end [8/8] (short) (narrow) %v445_v19, 16 }
  0xc3   : > { %v502_v41 = vpop.trf.xlu0 }
  0xc4   : > { %v470_v42 = vpop.trf.xlu1  ;;  %521 = vst.msk [vmem:[#allocation2 + $0x1a] sm:$0xff] %vm518_vm1, %v502_v41 }
  0xc5   : > { %519 = vst.msk [vmem:[#allocation2 + $0x2] sm:$0xff] %vm518_vm1, %v470_v42  ;;  %v909_v42 = vld [vmem:[#allocation13 + $0x68] sm:$0xff] }
  0xc6   : > { %934 = vmatpush.msrb.mxu2 %v909_v42 }
  0xc8   : > { %935 = vmatpush.msrb.mxu2 %v908_v60  ;;  %v1500_v60 = vld [vmem:[%s1970_s6] ss:$0 sm:$0xff] }
  0xca   : > { %936 = vmatpush.msrb.mxu2 %v907_v62 }
  0xcb   : > { %v503_v43 = vpop.trf.xlu0  ;;  %v537_v45 = vld [vmem:[#allocation2 + $0x1a] sm:$0xff] }
  0xcc   : > { %v471_v44 = vpop.trf.xlu1  ;;  %522 = vst.msk [vmem:[#allocation2 + $0x22] sm:$0xff] %vm518_vm1, %v503_v43  ;;  %1383 = vmatmul.msk.f32.vlgmr.msra.gmra.mxu1 %vm518_vm1, %v537_v45  ;;  %v535_v46 = vld [vmem:[#allocation2 + $0x2] sm:$0xff]  ;;  %v525_v54 = vld [vmem:[#allocation2 + $0x18] sm:$0xff]  ;;  %937 = vmatpush.msrb.mxu2 %v906_v0 }
  0xcd   : > { %520 = vst.msk [vmem:[#allocation2 + $0xa] sm:$0xff] %vm518_vm1, %v471_v44  ;;  %1381 = vmatmul.msk.f32.vlgmr.msra.gmra.mxu0 %vm518_vm1, %v535_v46  ;;  %v523_v50 = vld [vmem:[#allocation2] sm:$0xff]  ;;  %846 = vmatpush.msra.mxu1 %v825_v57 }
  0xce   : > { %1027 = vmatpush.msra.mxu0 %v1006_v1  ;;  %938 = vmatpush.msrb.mxu2 %v905_v3 }
  0xcf   : > { %847 = vmatpush.msra.mxu1 %v824_v58 }
  0xd0   : > { %939 = vmatpush.msrb.mxu2 %v904_v8 }
  0xd1   : > { %848 = vmatpush.msra.mxu1 %v823_v59  ;;  %v897_v59 = vld [vmem:[#allocation13 + $0x30] sm:$0xff] }
  0xd2   : > { %974 = vmatpush.msrb.mxu3 %v897_v59 }
  0xd3   : > { %v538_v47 = vld [vmem:[#allocation2 + $0x22] sm:$0xff]  ;;  %849 = vmatpush.msra.mxu1 %v822_v4 }
  0xd4   : > { %1384 = vmatmul.msk.f32.gmra.mxu1 %vm518_vm1, %v538_v47  ;;  %v630_v48 = vld [vmem:[#allocation2 + $0x4] sm:$0xff]  ;;  %v631_v51 = vld [vmem:[#allocation2 + $0xc] sm:$0xff]  ;;  %v632_v53 = vld [vmem:[#allocation2 + $0x1c] sm:$0xff]  ;;  %975 = vmatpush.msrb.mxu3 %v896_v61 }
  0xd5   : > { %v536_v49 = vld [vmem:[#allocation2 + $0xa] sm:$0xff]  ;;  %1389 = vmatmul.msk.f32.vlgmr.msra.gmra.mxu2 %vm518_vm1, %v630_v48  ;;  %v526_v56 = vld [vmem:[#allocation2 + $0x20] sm:$0xff]  ;;  %850 = vmatpush.msra.mxu1 %v821_v5 }
  0xd6   : > { %1382 = vmatmul.msk.f32.gmra.mxu0 %vm518_vm1, %v536_v49  ;;  %v524_v52 = vld [vmem:[#allocation2 + $0x8] sm:$0xff]  ;;  %976 = vmatpush.msrb.mxu3 %v895_v63 }
  0xd7   : > { %v633_v55 = vld [vmem:[#allocation2 + $0x24] sm:$0xff]  ;;  %851 = vmatpush.msra.mxu1 %v820_v15  ;;  %1430 = vmatpush.msra.mxu2 %v1006_v1 }
  0xd8   : > { %v1005_v4 = vld [vmem:[#allocation13 + $0xb0] sm:$0xff]  ;;  %977 = vmatpush.msrb.mxu3 %v894_v2 }
  0xd9   : > { %852 = vmatpush.msra.mxu1 %v819_v16  ;;  %v893_v5 = vld [vmem:[#allocation13 + $0x10] sm:$0xff]  ;;  %1028 = vmatpush.msra.mxu0 %v1005_v4 }
  0xda   : > { %978 = vmatpush.msrb.mxu3 %v893_v5  ;;  %1431 = vmatpush.msra.mxu2 %v1005_v4 }
  0xdb   : > { %853 = vmatpush.msra.mxu1 %v818_v17  ;;  %1029 = vmatpush.msra.mxu0 %v1004_v6 }
  0xdc   : > { %1385 = vmatmul.msk.f32.vlgmr.msrb.gmra.mxu1 %vm518_vm1, %v523_v50  ;;  %979 = vmatpush.msrb.mxu3 %v892_v7 }
  0xdd   : > { %1390 = vmatmul.msk.f32.gmra.mxu2 %vm518_vm1, %v631_v51  ;;  %1030 = vmatpush.msra.mxu0 %v1003_v10 }
  0xde   : > { %980 = vmatpush.msrb.mxu3 %v891_v9  ;;  %1432 = vmatpush.msra.mxu2 %v1004_v6 }
  0xdf   : > { %1031 = vmatpush.msra.mxu0 %v1002_v11 }
  0xe0   : > { %1433 = vmatpush.msra.mxu2 %v1003_v10 }
  0xe1   : > { %1032 = vmatpush.msra.mxu0 %v1001_v12 }
  0xe2   : > { %1434 = vmatpush.msra.mxu2 %v1002_v11 }
  0xe3   : > { %1033 = vmatpush.msra.mxu0 %v1000_v13 }
  0xe4   : > { %1386 = vmatmul.msk.f32.gmra.mxu1 %vm518_vm1, %v524_v52  ;;  %1435 = vmatpush.msra.mxu2 %v1001_v12 }
  0xe5   : > { %1391 = vmatmul.msk.f32.gmra.mxu2 %vm518_vm1, %v632_v53 }
  0xe6   : > { %1436 = vmatpush.msra.mxu2 %v1000_v13 }
  0xec   : > { %1387 = vmatmul.msk.f32.gmra.mxu1 %vm518_vm1, %v525_v54 }
  0xed   : > { %1392 = vmatmul.msk.f32.gmra.mxu2 %vm518_vm1, %v633_v55 }
  0xf4   : > { %1388 = vmatmul.msk.f32.gmra.mxu1 %vm518_vm1, %v526_v56 }
 0x149   : > { %v583_v14 = vpop.f32.mrf.mxu1 }
 0x14a   : > { %v577_v19 = vpop.f32.mrf.mxu0 }
 0x151   : > { %v586_v18 = vpop.f32.mrf.mxu1 }
 0x153   : > { %v580_v28 = vpop.f32.mrf.mxu0 }
 0x158   : > { %v672_v20 = vpop.f32.mrf.mxu2 }
 0x159   : > { %v618_v21 = vpop.f32.mrf.mxu1 }
 0x15a   : > { %v619_v22 = vadd.f32 %v618_v21, %v577_v19 }
 0x15c   : > { %v684_v25 = vadd.f32 %v672_v20, %v619_v22 }
 0x15e   : > { %v692_v26 = vadd.f32 %v1498_v23, %v684_v25 }
 0x160   : > { %698 = vst.msk [vmem:[#allocation3] sm:$0xff] %vm518_vm1, %v692_v26  ;;  %v675_v27 = vpop.f32.mrf.mxu2 }
 0x161   : > { %702 = vst.msk [vmem:[#allocation2 + $0x2] sm:$0xff] %vm518_vm1, %v692_v26  ;;  %v621_v29 = vpop.f32.mrf.mxu1 }
 0x162   : > { %v622_v30 = vadd.f32 %v621_v29, %v580_v28 }
 0x164   : > { %v685_v31 = vadd.f32 %v675_v27, %v622_v30 }
 0x166   : > { %v693_v32 = vadd.f32 %v1498_v23, %v685_v31 }
 0x168   : > { %699 = vst.msk [vmem:[#allocation3 + $0x8] sm:$0xff] %vm518_vm1, %v693_v32  ;;  %v718_v33 = vld [vmem:[#allocation2 + $0x2] sm:$0xff]  ;;  %v678_v35 = vpop.f32.mrf.mxu2 }
 0x169   : > { %v706_v34 = vld [vmem:[#allocation2] sm:$0xff]  ;;  %703 = vst.msk [vmem:[#allocation2 + $0xa] sm:$0xff] %vm518_vm1, %v693_v32  ;;  %1393 = vmatmul.msk.f32.vlgmr.msra.gmra.mxu3 %vm518_vm1, %v718_v33  ;;  %v624_v36 = vpop.f32.mrf.mxu1 }
 0x16a   : > { %1397 = vmatmul.msk.f32.vlgmr.msrb.gmra.mxu0 %vm518_vm1, %v706_v34  ;;  %v625_v37 = vadd.f32 %v624_v36, %v583_v14  ;;  %v999_v14 = vld [vmem:[#allocation13 + $0x80] sm:$0xff] }
 0x16b   : > { %1034 = vmatpush.msra.mxu0 %v999_v14  ;;  %1437 = vmatpush.msra.mxu2 %v999_v14 }
 0x16c   : > { %v686_v41 = vadd.f32 %v678_v35, %v625_v37 }
 0x16e   : > { %v694_v43 = vadd.f32 %v1498_v23, %v686_v41 }
 0x170   : > { %700 = vst.msk [vmem:[#allocation3 + $0x10] sm:$0xff] %vm518_vm1, %v694_v43  ;;  %v719_v44 = vld [vmem:[#allocation2 + $0xa] sm:$0xff]  ;;  %v681_v49 = vpop.f32.mrf.mxu2 }
 0x171   : > { %v707_v45 = vld [vmem:[#allocation2 + $0x8] sm:$0xff]  ;;  %704 = vst.msk [vmem:[#allocation2 + $0x1a] sm:$0xff] %vm518_vm1, %v694_v43  ;;  %1394 = vmatmul.msk.f32.gmra.mxu3 %vm518_vm1, %v719_v44  ;;  %v627_v47 = vpop.f32.mrf.mxu1 }
 0x172   : > { %v813_v46 = vld [vmem:[#allocation2 + $0x4] sm:$0xff]  ;;  %1398 = vmatmul.msk.f32.gmra.mxu0 %vm518_vm1, %v707_v45  ;;  %v628_v48 = vadd.f32 %v627_v47, %v586_v18  ;;  %v814_v54 = vld [vmem:[#allocation2 + $0xc] sm:$0xff]  ;;  %v1499_v18 = vld [vmem:[%s1968_s4] ss:$0 sm:$0xff] }
 0x173   : > { %1401 = vmatmul.msk.f32.vlgmr.msra.gmra.mxu1 %vm518_vm1, %v813_v46 }
 0x174   : > { %v687_v50 = vadd.f32 %v681_v49, %v628_v48 }
 0x176   : > { %v695_v51 = vadd.f32 %v1498_v23, %v687_v50 }
 0x178   : > { %701 = vst.msk [vmem:[#allocation3 + $0x18] sm:$0xff] %vm518_vm1, %v695_v51  ;;  %v720_v52 = vld [vmem:[#allocation2 + $0x1a] sm:$0xff] }
 0x179   : > { %v708_v53 = vld [vmem:[#allocation2 + $0x18] sm:$0xff]  ;;  %705 = vst.msk [vmem:[#allocation2 + $0x22] sm:$0xff] %vm518_vm1, %v695_v51  ;;  %1395 = vmatmul.msk.f32.gmra.mxu3 %vm518_vm1, %v720_v52 }
 0x17a   : > { %1399 = vmatmul.msk.f32.gmra.mxu0 %vm518_vm1, %v708_v53 }
 0x17b   : > { %1402 = vmatmul.msk.f32.gmra.mxu1 %vm518_vm1, %v814_v54 }
 0x180   : > { %v721_v55 = vld [vmem:[#allocation2 + $0x22] sm:$0xff] }
 0x181   : > { %v709_v56 = vld [vmem:[#allocation2 + $0x20] sm:$0xff]  ;;  %1396 = vmatmul.msk.f32.gmra.mxu3 %vm518_vm1, %v721_v55 }
 0x182   : > { %v815_v57 = vld [vmem:[#allocation2 + $0x1c] sm:$0xff]  ;;  %1400 = vmatmul.msk.f32.gmra.mxu0 %vm518_vm1, %v709_v56  ;;  %v816_v58 = vld [vmem:[#allocation2 + $0x24] sm:$0xff] }
 0x183   : > { %1403 = vmatmul.msk.f32.gmra.mxu1 %vm518_vm1, %v815_v57 }
 0x18b   : > { %1404 = vmatmul.msk.f32.gmra.mxu1 %vm518_vm1, %v816_v58 }
 0x1e7   : > { %v801_v15 = vpop.f32.mrf.mxu0 }
 0x1ec   : > { %v760_v16 = vpop.f32.mrf.mxu3 }
 0x1ed   : > { %v802_v17 = vadd.f32 %v801_v15, %v760_v16 }
 0x1ef   : > { %v804_v20 = vpop.f32.mrf.mxu0 }
 0x1f0   : > { %v855_v19 = vpop.f32.mrf.mxu1 }
 0x1f1   : > { %v867_v21 = vadd.f32 %v855_v19, %v802_v17 }
 0x1f3   : > { %v875_v22 = vadd.f32 %v1499_v18, %v867_v21 }
 0x1f4   : > { %v763_v25 = vpop.f32.mrf.mxu3 }
 0x1f5   : > { %v879_v23 = vmax.f32 %v875_v22, 0.0  ;;  %v805_v26 = vadd.f32 %v804_v20, %v763_v25 }
 0x1f7   : > { %883 = vst.msk [vmem:[#allocation2 + $0x2] sm:$0xff] %vm518_vm1, %v879_v23  ;;  %v807_v29 = vpop.f32.mrf.mxu0 }
 0x1f8   : > { %v858_v27 = vpop.f32.mrf.mxu1 }
 0x1f9   : > { %v868_v28 = vadd.f32 %v858_v27, %v805_v26 }
 0x1fb   : > { %v876_v30 = vadd.f32 %v1499_v18, %v868_v28 }
 0x1fc   : > { %v766_v32 = vpop.f32.mrf.mxu3 }
 0x1fd   : > { %v880_v31 = vmax.f32 %v876_v30, 0.0  ;;  %v808_v33 = vadd.f32 %v807_v29, %v766_v32 }
 0x1fe   : > { %v899_v34 = vld [vmem:[#allocation2 + $0x2] sm:$0xff] }
 0x1ff   : > { %v887_v35 = vld [vmem:[#allocation2] sm:$0xff]  ;;  %884 = vst.msk [vmem:[#allocation2 + $0xa] sm:$0xff] %vm518_vm1, %v880_v31  ;;  %1405 = vmatmul.msk.f32.vlgmr.msrb.gmra.mxu2 %vm518_vm1, %v899_v34  ;;  %v810_v39 = vpop.f32.mrf.mxu0 }
 0x200   : > { %1409 = vmatmul.msk.f32.vlgmr.msrb.gmra.mxu3 %vm518_vm1, %v887_v35  ;;  %v861_v36 = vpop.f32.mrf.mxu1 }
 0x201   : > { %v869_v37 = vadd.f32 %v861_v36, %v808_v33 }
 0x203   : > { %v877_v38 = vadd.f32 %v1499_v18, %v869_v37 }
 0x204   : > { %v769_v41 = vpop.f32.mrf.mxu3 }
 0x205   : > { %v881_v40 = vmax.f32 %v877_v38, 0.0  ;;  %v811_v42 = vadd.f32 %v810_v39, %v769_v41 }
 0x206   : > { %v900_v43 = vld [vmem:[#allocation2 + $0xa] sm:$0xff] }
 0x207   : > { %v888_v44 = vld [vmem:[#allocation2 + $0x8] sm:$0xff]  ;;  %885 = vst.msk [vmem:[#allocation2 + $0x1a] sm:$0xff] %vm518_vm1, %v881_v40  ;;  %1406 = vmatmul.msk.f32.gmra.mxu2 %vm518_vm1, %v900_v43 }
 0x208   : > { %v994_v45 = vld [vmem:[#allocation2 + $0x4] sm:$0xff]  ;;  %1410 = vmatmul.msk.f32.gmra.mxu3 %vm518_vm1, %v888_v44  ;;  %v864_v46 = vpop.f32.mrf.mxu1  ;;  %v995_v52 = vld [vmem:[#allocation2 + $0xc] sm:$0xff] }
 0x209   : > { %1413 = vmatmul.msk.f32.vlgmr.msra.gmra.mxu0 %vm518_vm1, %v994_v45  ;;  %v870_v47 = vadd.f32 %v864_v46, %v811_v42  ;;  %v1065_v45 = vld [vmem:[#allocation5] sm:$0x1] }
 0x20b   : > { %v878_v48 = vadd.f32 %v1499_v18, %v870_v47 }
 0x20d   : > { %v882_v49 = vmax.f32 %v878_v48, 0.0  ;;  %v1082_v48 = vld [vmem:[#allocation6] sm:$0x1] }
 0x20e   : > { %v901_v50 = vld [vmem:[#allocation2 + $0x1a] sm:$0xff] }
 0x20f   : > { %v889_v51 = vld [vmem:[#allocation2 + $0x18] sm:$0xff]  ;;  %886 = vst.msk [vmem:[#allocation2 + $0x22] sm:$0xff] %vm518_vm1, %v882_v49  ;;  %1407 = vmatmul.msk.f32.gmra.mxu2 %vm518_vm1, %v901_v50 }
 0x210   : > { %1411 = vmatmul.msk.f32.gmra.mxu3 %vm518_vm1, %v889_v51 }
 0x211   : > { %1414 = vmatmul.msk.f32.gmra.mxu0 %vm518_vm1, %v995_v52 }
 0x216   : > { %v902_v53 = vld [vmem:[#allocation2 + $0x22] sm:$0xff] }
 0x217   : > { %v890_v54 = vld [vmem:[#allocation2 + $0x20] sm:$0xff]  ;;  %1408 = vmatmul.msk.f32.gmra.mxu2 %vm518_vm1, %v902_v53 }
 0x218   : > { %v996_v55 = vld [vmem:[#allocation2 + $0x1c] sm:$0xff]  ;;  %1412 = vmatmul.msk.f32.gmra.mxu3 %vm518_vm1, %v890_v54  ;;  %v997_v56 = vld [vmem:[#allocation2 + $0x24] sm:$0xff] }
 0x219   : > { %1415 = vmatmul.msk.f32.gmra.mxu0 %vm518_vm1, %v996_v55 }
 0x21f   : > { %1416 = vmatmul.msk.f32.vlgmr.msra.gmra.mxu2 %vm518_vm1, %v997_v56 }
 0x282   : > { %v941_v57 = vpop.f32.mrf.mxu2 }
 0x283   : > { %v982_v58 = vpop.f32.mrf.mxu3 }
 0x284   : > { %v983_v59 = vadd.f32 %v982_v58, %v941_v57 }
 0x286   : > { %v1036_v61 = vpop.f32.mrf.mxu0 }
 0x287   : > { %v1048_v62 = vadd.f32 %v1036_v61, %v983_v59 }
 0x289   : > { %v1056_v63 = vadd.f32 %v1500_v60, %v1048_v62 }
 0x28a   : > { %v944_v0 = vpop.f32.mrf.mxu2 }
 0x28b   : > { %1061 = vst.msk [vmem:[#allocation4] sm:$0xff] %vm518_vm1, %v1056_v63  ;;  %v985_v1 = vpop.f32.mrf.mxu3  ;;  %v1083_v14 = vmul.f32 %v1056_v63, %v1056_v63  ;;  %v1066_v19 = vsel %vm518_vm1, %v1056_v63, 0.0 }
 0x28c   : > { %v986_v2 = vadd.f32 %v985_v1, %v944_v0 }
 0x28d   : > { %v1087_v25 = vsel %vm518_vm1, %v1083_v14, 0.0 }
 0x28e   : > { %v1039_v3 = vpop.f32.mrf.mxu0 }
 0x28f   : > { %v1049_v4 = vadd.f32 %v1039_v3, %v986_v2 }
 0x291   : > { %v1057_v5 = vadd.f32 %v1500_v60, %v1049_v4 }
 0x292   : > { %v947_v24 = vpop.f32.mrf.mxu2 }
 0x293   : > { %1062 = vst.msk [vmem:[#allocation4 + $0x8] sm:$0xff] %vm518_vm1, %v1057_v5  ;;  %v988_v6 = vpop.f32.mrf.mxu3  ;;  %v1084_v13 = vmul.f32 %v1057_v5, %v1057_v5  ;;  %v1067_v15 = vsel %vm518_vm1, %v1057_v5, 0.0 }
 0x294   : > { %v989_v7 = vadd.f32 %v988_v6, %v947_v24  ;;  %v1068_v23 = vadd.f32 %v1067_v15, %v1066_v19 }
 0x295   : > { %v1088_v20 = vsel %vm518_vm1, %v1084_v13, 0.0 }
 0x296   : > { %v1042_v8 = vpop.f32.mrf.mxu0  ;;  %v1089_v28 = vadd.f32 %v1088_v20, %v1087_v25 }
 0x297   : > { %v1050_v9 = vadd.f32 %v1042_v8, %v989_v7 }
 0x299   : > { %v1058_v10 = vadd.f32 %v1500_v60, %v1050_v9 }
 0x29a   : > { %v950_v11 = vpop.f32.mrf.mxu2 }
 0x29b   : > { %1063 = vst.msk [vmem:[#allocation4 + $0x10] sm:$0xff] %vm518_vm1, %v1058_v10  ;;  %v991_v12 = vpop.f32.mrf.mxu3  ;;  %v1085_v16 = vmul.f32 %v1058_v10, %v1058_v10  ;;  %v1069_v21 = vsel %vm518_vm1, %v1058_v10, 0.0 }
 0x29c   : > { %v992_v17 = vadd.f32 %v991_v12, %v950_v11  ;;  %v1070_v29 = vadd.f32 %v1069_v21, %v1068_v23 }
 0x29d   : > { %v1090_v26 = vsel %vm518_vm1, %v1085_v16, 0.0 }
 0x29e   : > { %v1091_v32 = vadd.f32 %v1090_v26, %v1089_v28 }
 0x2a2   : > { %v1045_v18 = vpop.f32.mrf.mxu2 }
 0x2a3   : > { %v1051_v22 = vadd.f32 %v1045_v18, %v992_v17 }
 0x2a5   : > { %v1059_v27 = vadd.f32 %v1500_v60, %v1051_v22 }
 0x2a7   : > { %1064 = vst.msk [vmem:[#allocation4 + $0x18] sm:$0xff] %vm518_vm1, %v1059_v27  ;;  %v1071_v30 = vsel %vm518_vm1, %v1059_v27, 0.0  ;;  %v1086_v31 = vmul.f32 %v1059_v27, %v1059_v27 }
 0x2a8   : > { %v1072_v33 = vadd.f32 %v1071_v30, %v1070_v29 }
 0x2a9   : > { %v1092_v34 = vsel %vm518_vm1, %v1086_v31, 0.0 }
 0x2aa   : > { %v1073_v35 = vrot.slane %v1072_v33, 4  ;;  %v1093_v36 = vadd.f32 %v1092_v34, %v1091_v32 }
 0x2ac   : > { %v1074_v37 = vadd.f32 %v1073_v35, %v1072_v33  ;;  %v1094_v38 = vrot.slane %v1093_v36, 4 }
 0x2ae   : > { %v1075_v39 = vrot.slane %v1074_v37, 2  ;;  %v1095_v40 = vadd.f32 %v1094_v38, %v1093_v36 }
 0x2b0   : > { %v1076_v41 = vadd.f32 %v1075_v39, %v1074_v37  ;;  %v1096_v42 = vrot.slane %v1095_v40, 2 }
 0x2b2   : > { %v1077_v43 = vrot.slane %v1076_v41, 1  ;;  %v1097_v44 = vadd.f32 %v1096_v42, %v1095_v40 }
 0x2b4   : > { %v1078_v46 = vadd.f32 %v1077_v43, %v1076_v41  ;;  %v1098_v47 = vrot.slane %v1097_v44, 1 }
 0x2b6   : > { %v1079_v49 = vadd.f32 %v1078_v46, %v1065_v45  ;;  %v1099_v50 = vadd.f32 %v1098_v47, %v1097_v44 }
 0x2b8   : > { %1081 = vst.msk [vmem:[#allocation5] sm:$0x1] %vm435_vm2, %v1079_v49  ;;  %v1100_v51 = vadd.f32 %v1099_v50, %v1082_v48 }
 0x2ba   : > { %1101 = vst.msk [vmem:[#allocation6] sm:$0x1] %vm435_vm2, %v1100_v51 }
 0x2bb PF: > { %p1417_p8 = scmp.ne.s32.totalorder %s1619_s30, 1 }
 0x2bd   : > { %1105 = sbr.rel (%p1417_p8) target bundleno = 994 (0x3e2), region = 80 }
 0x2c2   : > { %v1635_v52 = vmov 32.0   ;;  %v1110_v57 = vld [vmem:[#allocation5] sm:$0x1]  ;;  %v1119_v59 = vld [vmem:[#allocation6] sm:$0x1]  ;;  %vm1137_vm7 = vcmask 516096  }
 0x2c3   : > { %1503 = vrcp.f32 %v1635_v52  ;;  %v1135_v8 = vld [vmem:[%s1971_s7] sm:$0x1]  ;;  %v1147_v15 = vld [vmem:[#allocation4] sm:$0xff]  ;;  %v1150_v17 = vld [vmem:[#allocation4 + $0x18] sm:$0xff]  ;;  %vm1242_vm8 = vcmask 130048  }
 0x2c4   : > { %v1139_v11 = vld [vmem:[%s1972_s8] sm:$0x1]  ;;  %v1148_v18 = vld [vmem:[#allocation4 + $0x8] sm:$0xff]  ;;  %v1166_v26 = vld [vmem:[#allocation3] sm:$0xff] }
 0x2c5   : > { %v1149_v14 = vld [vmem:[#allocation4 + $0x10] sm:$0xff]  ;;  %v1169_v33 = vld [vmem:[#allocation3 + $0x18] sm:$0xff]  ;;  %v1167_v34 = vld [vmem:[#allocation3 + $0x8] sm:$0xff] }
 0x2c6   : > { %v1168_v25 = vld [vmem:[#allocation3 + $0x10] sm:$0xff] }
 0x2c9   : > { %v1504_v53 = vpop.eup %1503 }
 0x2ca   : > { %v1112_v54 = vmul.f32 32.0, %v1504_v53  ;;  %vm1116_vm3 = vweird.f32 %v1504_v53 }
 0x2cc   : > { %v1113_v55 = vsub.f32 1.0, %v1112_v54 }
 0x2ce   : > { %v1114_v56 = vmul.f32 %v1504_v53, %v1113_v55 }
 0x2d0   : > { %v1115_v58 = vadd.f32 %v1504_v53, %v1114_v56 }
 0x2d2   : > { %v1117_v60 = vsel %vm1116_vm3, %v1504_v53, %v1115_v58 }
 0x2d3   : > { %v1118_v61 = vmul.f32 %v1117_v60, %v1110_v57  ;;  %v1120_v62 = vmul.f32 %v1119_v59, %v1117_v60 }
 0x2d5   : > { %v1121_v63 = vmul.f32 %v1118_v61, %v1118_v61 }
 0x2d7   : > { %v1122_v0 = vsub.f32 %v1120_v62, %v1121_v63 }
 0x2d9   : > { %v1123_v1 = vmax.f32 %v1122_v0, 0.0 }
 0x2db   : > { %v1124_v2 = vadd.f32 1e-12, %v1123_v1 }
 0x2dd   : > { %1505 = vrsqrt.f32 %v1124_v2  ;;  %vm1131_vm4 = vweird.f32 %v1124_v2 }
 0x2e3   : > { %v1506_v3 = vpop.eup %1505 }
 0x2e4   : > { %v1126_v4 = vmul.f32 %v1506_v3, %v1124_v2  ;;  %vm1132_vm5 = vweird.f32 %v1506_v3 }
 0x2e5   : > { %vm1133_vm6 = vmor %vm1131_vm4, %vm1132_vm5 }
 0x2e6   : > { %v1127_v5 = vmul.f32 %v1506_v3, %v1126_v4 }
 0x2e8   : > { %v1128_v24 = vmul.f32 0.5, %v1127_v5 }
 0x2ea   : > { %v1129_v6 = vsub.f32 1.5, %v1128_v24 }
 0x2ec   : > { %v1130_v7 = vmul.f32 %v1506_v3, %v1129_v6 }
 0x2ee   : > { %v1134_v9 = vsel %vm1133_vm6, %v1506_v3, %v1130_v7 }
 0x2ef   : > { %v1136_v10 = vmul.f32 %v1135_v8, %v1134_v9 }
 0x2f1   : > { %1138 = vst.msk [vmem:[#allocation7] sm:$0x1] %vm1137_vm7, %v1136_v10  ;;  %v1140_v12 = vmul.f32 %v1136_v10, %v1118_v61 }
 0x2f3   : > { %v1141_v13 = vsub.f32 %v1139_v11, %v1140_v12 }
 0x2f5   : > { %1142 = vst.msk [vmem:[#allocation8] sm:$0x1] %vm1137_vm7, %v1141_v13 }
 0x2f8   : > { %v1501_v16 = vld [vmem:[#allocation7] ss:$0 sm:$0xff] }
 0x2f9   : > { %v1156_v19 = vmul.f32 %v1501_v16, %v1149_v14  ;;  %v1154_v20 = vmul.f32 %v1501_v16, %v1147_v15  ;;  %v1157_v22 = vmul.f32 %v1501_v16, %v1150_v17  ;;  %v1155_v23 = vmul.f32 %v1501_v16, %v1148_v18 }
 0x2fc   : > { %v1502_v21 = vld [vmem:[#allocation8] ss:$0 sm:$0xff] }
 0x2fd   : > { %v1163_v27 = vadd.f32 %v1502_v21, %v1156_v19  ;;  %v1161_v28 = vadd.f32 %v1502_v21, %v1154_v20  ;;  %v1164_v31 = vadd.f32 %v1502_v21, %v1157_v22  ;;  %v1162_v32 = vadd.f32 %v1502_v21, %v1155_v23 }
 0x2ff   : > { %v1172_v29 = vadd.f32 %v1168_v25, %v1163_v27  ;;  %v1170_v30 = vadd.f32 %v1166_v26, %v1161_v28  ;;  %v1173_v37 = vadd.f32 %v1169_v33, %v1164_v31  ;;  %v1171_v38 = vadd.f32 %v1167_v34, %v1162_v32 }
 0x301   : > { %v1176_v35 = vmax.f32 %v1172_v29, 0.0  ;;  %v1174_v36 = vmax.f32 %v1170_v30, 0.0  ;;  %v1177_v39 = vmax.f32 %v1173_v37, 0.0  ;;  %v1175_v40 = vmax.f32 %v1171_v38, 0.0 }
 0x303   : > { %1210 = vxpose.xlu1.b32.start [1/2] (short) (narrow) %v1176_v35, 64  ;;  %1178 = vxpose.xlu0.b32.start [1/2] (short) (narrow) %v1174_v36, 64 }
 0x30b   : > { %1211 = vxpose.xlu1.b32.end [2/2] (short) (narrow) %v1177_v39, 64  ;;  %1179 = vxpose.xlu0.b32.end [2/2] (short) (narrow) %v1175_v40, 64 }
 0x3a7   : > { %v1226_v41 = vpop.trf.xlu1  ;;  %v1194_v42 = vpop.trf.xlu0 }
 0x3a8   : > { %1251 = vst.msk [vmem:[%s1973_s9 + $0x40] sm:$0xff] %vm1242_vm8, %v1226_v41 }
 0x3a9   : > { %1243 = vst.msk [vmem:[%s1973_s9] sm:$0xff] %vm1242_vm8, %v1194_v42 }
 0x3af   : > { %v1227_v43 = vpop.trf.xlu1  ;;  %v1195_v44 = vpop.trf.xlu0 }
 0x3b0   : > { %1252 = vst.msk [vmem:[%s1973_s9 + $0x48] sm:$0xff] %vm1242_vm8, %v1227_v43 }
 0x3b1   : > { %1244 = vst.msk [vmem:[%s1973_s9 + $0x8] sm:$0xff] %vm1242_vm8, %v1195_v44 }
 0x3b7   : > { %v1228_v45 = vpop.trf.xlu1  ;;  %v1196_v46 = vpop.trf.xlu0 }
 0x3b8   : > { %1253 = vst.msk [vmem:[%s1973_s9 + $0x50] sm:$0xff] %vm1242_vm8, %v1228_v45 }
 0x3b9   : > { %1245 = vst.msk [vmem:[%s1973_s9 + $0x10] sm:$0xff] %vm1242_vm8, %v1196_v46 }
 0x3bf   : > { %v1229_v47 = vpop.trf.xlu1  ;;  %v1197_v48 = vpop.trf.xlu0 }
 0x3c0   : > { %1254 = vst.msk [vmem:[%s1973_s9 + $0x58] sm:$0xff] %vm1242_vm8, %v1229_v47 }
 0x3c1   : > { %1246 = vst.msk [vmem:[%s1973_s9 + $0x18] sm:$0xff] %vm1242_vm8, %v1197_v48 }
 0x3c7   : > { %v1230_v49 = vpop.trf.xlu1  ;;  %v1198_v50 = vpop.trf.xlu0 }
 0x3c8   : > { %1255 = vst.msk [vmem:[%s1973_s9 + $0x60] sm:$0xff] %vm1242_vm8, %v1230_v49 }
 0x3c9   : > { %1247 = vst.msk [vmem:[%s1973_s9 + $0x20] sm:$0xff] %vm1242_vm8, %v1198_v50 }
 0x3cf   : > { %v1231_v51 = vpop.trf.xlu1  ;;  %v1199_v52 = vpop.trf.xlu0 }
 0x3d0   : > { %1256 = vst.msk [vmem:[%s1973_s9 + $0x68] sm:$0xff] %vm1242_vm8, %v1231_v51 }
 0x3d1   : > { %1248 = vst.msk [vmem:[%s1973_s9 + $0x28] sm:$0xff] %vm1242_vm8, %v1199_v52 }
 0x3d7   : > { %v1232_v53 = vpop.trf.xlu1  ;;  %v1200_v54 = vpop.trf.xlu0 }
 0x3d8   : > { %1257 = vst.msk [vmem:[%s1973_s9 + $0x70] sm:$0xff] %vm1242_vm8, %v1232_v53 }
 0x3d9   : > { %1249 = vst.msk [vmem:[%s1973_s9 + $0x30] sm:$0xff] %vm1242_vm8, %v1200_v54 }
 0x3df   : > { %v1233_v55 = vpop.trf.xlu1  ;;  %v1201_v56 = vpop.trf.xlu0 }
 0x3e0   : > { %1258 = vst.msk [vmem:[%s1973_s9 + $0x78] sm:$0xff] %vm1242_vm8, %v1233_v55 }
 0x3e1   : > { %1250 = vst.msk [vmem:[%s1973_s9 + $0x38] sm:$0xff] %vm1242_vm8, %v1201_v56 }
 0x3e2 PF: > { %s21_s11 = sadd.s32 1, %s1627_s11   ;;  %s1977_s30 = smov %s1623_s10 }
 0x3e3   : > { %p18_p9 = scmp.ge.s32.totalorder %s21_s11, 4   ;;  %s1978_s10 = smov %s1980_s21 }
 0x3e5   :  { %20 = sbr.rel (!%p18_p9) target bundleno = 3 (0x3), region = 125 }
 0x3ea   :  { %1286 = vsyncpa [#allocation10], 1 }
 0x3eb   :  { %1288 = vsyncpa [#allocation10 + $0x1], 1 }
 0x3ec   :  { %1289 = vsyncpa [#allocation12], 1 }

</bundles_post_ra>
